<compile_context>
chip_gen: v6e
topology: v6e:2x2x1
jax: 0.10.0
libtpu: 0.0.40
codegen_flags: <defaults>
</compile_context>

<pallas_src>
import jax
import jax.numpy as jnp
from jax.experimental import pallas as pl
from jax.experimental.pallas import tpu as pltpu

NUM_CLASSES = 264
NUM_CLASSES_PAD = 384          # pad classifier lanes to a multiple of 128; sliced after the kernel


def _silu(x):
    return x * jax.nn.sigmoid(x)


# ------------------------------ fused kernel -------------------------------- #

def _fused_backbone_kernel(
    # inputs
    xph_ref,                                   # (1, 4, Ho+1, Wo+1, Cin) f32  phase-split padded image
    stem_w_ref, stem_s_ref, stem_b_ref,        # (9, Cin, C0) bf16, (1, C0) f32, (1, C0) f32
    exp_w_ref, exp_s_ref, exp_b_ref,           # (C0, Cm) bf16, (1, Cm), (1, Cm)
    dw_w_ref, dw_s_ref, dw_b_ref,              # (9, Cm) f32,  (1, Cm), (1, Cm)
    se1_w_ref, se1_b_ref,                      # (Cm, Cse) bf16, (1, Cse)
    se2_w_ref, se2_b_ref,                      # (Cse, Cm) bf16, (1, Cm)
    proj_w_ref, proj_s_ref, proj_b_ref,        # (Cm, Cp) bf16, (1, Cp), (1, Cp)
    head_w_ref, head_s_ref, head_b_ref,        # (Cp, Cf) bf16, (1, Cf), (1, Cf)
    cls_w_ref, cls_b_ref,                      # (Cf, Npad) bf16, (1, Npad)
    # outputs
    logits_ref,                                # (1, 1, Npad) f32
    # scratch
    dwbuf_ref,                                 # (Ho+2, Wo+2, Cm) f32 VMEM
):
    f32, bf16 = jnp.float32, jnp.bfloat16

    _, _, hp1, wp1, cin = xph_ref.shape
    ho, wo = hp1 - 1, wp1 - 1
    m = ho * wo
    cm = dw_w_ref.shape[1]
    npad = cls_b_ref.shape[1]

    # ---- stem: 3x3 stride-2 conv (+folded BN +SiLU).  Patches are built in-kernel
    #      from the 4 stride-2 phases with unit-stride slices; 9 accumulating MXU dots.
    xph = xph_ref[0]                                           # (4, Ho+1, Wo+1, Cin)
    stem_w = stem_w_ref[...]                                   # (9, Cin, C0) bf16  (hoisted load)
    acc0 = jnp.zeros((m, stem_w.shape[-1]), f32)
    for dy in range(3):
        for dx in range(3):
            ph = (dy % 2) * 2 + (dx % 2)
            patch = xph[ph, dy // 2:dy // 2 + ho, dx // 2:dx // 2 + wo, :]
            cols = patch.reshape(m, cin).astype(bf16)
            acc0 = acc0 + jnp.dot(cols, stem_w[dy * 3 + dx],
                                  preferred_element_type=f32)
    h = _silu(acc0 * stem_s_ref[...] + stem_b_ref[...])        # (M, C0) f32

    # ---- MBConv expand: 1x1 conv (+BN +SiLU), bf16 on the MXU.
    h = jnp.dot(h.astype(bf16), exp_w_ref[...], preferred_element_type=f32)
    h = _silu(h * exp_s_ref[...] + exp_b_ref[...])             # (M, Cm) f32

    # ---- depthwise 3x3 (stride 1, pad 1) + BN + SiLU, fully VMEM-resident.
    dwbuf_ref[...] = jnp.zeros_like(dwbuf_ref)
    dwbuf_ref[1:1 + ho, 1:1 + wo, :] = h.reshape(ho, wo, cm)
    dw_w = dw_w_ref[...]                                       # hoisted: all 9 taps loaded once
    acc = jnp.zeros((ho, wo, cm), f32)
    for dy in range(3):
        for dx in range(3):
            acc = acc + dwbuf_ref[dy:dy + ho, dx:dx + wo, :] * dw_w[dy * 3 + dx]
    h = _silu(acc * dw_s_ref[...] + dw_b_ref[...])             # (Ho, Wo, Cm)
    h = h.reshape(m, cm)

    # ---- squeeze-and-excite fused as an epilogue (GAP + 2 tiny matmuls + gate).
    s = jnp.mean(h, axis=0, keepdims=True)                     # (1, Cm)
    s = _silu(jnp.dot(s.astype(bf16), se1_w_ref[...],
                      preferred_element_type=f32) + se1_b_ref[...])
    s = jax.nn.sigmoid(jnp.dot(s.astype(bf16), se2_w_ref[...],
                               preferred_element_type=f32) + se2_b_ref[...])
    h = h * s                                                  # (M, Cm)

    # ---- project 1x1 (+BN, linear).
    h = jnp.dot(h.astype(bf16), proj_w_ref[...], preferred_element_type=f32)
    h = h * proj_s_ref[...] + proj_b_ref[...]                  # (M, Cp)

    # ---- head 1x1 (+BN +SiLU) then global average pool -> features.
    h = jnp.dot(h.astype(bf16), head_w_ref[...], preferred_element_type=f32)
    h = _silu(h * head_s_ref[...] + head_b_ref[...])           # (M, Cf)
    feats = jnp.mean(h, axis=0, keepdims=True)                 # (1, Cf)

    # ---- classifier Linear (bias only), lane-dense padded output.
    logits = jnp.dot(feats.astype(bf16), cls_w_ref[...],
                     preferred_element_type=f32) + cls_b_ref[...]
    logits_ref[...] = logits.reshape(1, 1, npad)


def _const_spec(shape):
    zeros = (0,) * len(shape)
    return pl.BlockSpec(shape, lambda n, _z=zeros: _z)


# -------------------------------- forward ----------------------------------- #

def bird_model_forward(params, img_nchw):
    """NCHW image batch -> (N, NUM_CLASSES) logits (like the PyTorch module)."""
    p = params
    x = jnp.transpose(img_nchw, (0, 2, 3, 1)).astype(jnp.float32)     # NHWC
    n, h, w, cin = x.shape
    ho, wo = h // 2, w // 2

    # Phase-split (space-to-depth) of the pad=1 image: same total bytes as the input,
    # lets the kernel assemble 3x3 stride-2 patches with unit-stride slices (no 9x im2col).
    xp = jnp.pad(x, ((0, 0), (1, 1), (1, 1), (0, 0)))
    xph = jnp.stack([xp[:, a::2, b::2, :] for a in (0, 1) for b in (0, 1)],
                    axis=1)                                           # (N, 4, Ho+1, Wo+1, Cin)

    cm = p["exp_w"].shape[-1]
    npad = p["cls_w"].shape[-1]

    weight_args = (
        p["stem_w"], p["stem_scale"], p["stem_bias"],
        p["exp_w"], p["exp_scale"], p["exp_bias"],
        p["dw_w"], p["dw_scale"], p["dw_bias"],
        p["se1_w"], p["se1_b"],
        p["se2_w"], p["se2_b"],
        p["proj_w"], p["proj_scale"], p["proj_bias"],
        p["head_w"], p["head_scale"], p["head_bias"],
        p["cls_w"], p["cls_b"],
    )

    in_specs = [pl.BlockSpec((1, 4, ho + 1, wo + 1, cin),
                             lambda i: (i, 0, 0, 0, 0))]
    in_specs += [_const_spec(a.shape) for a in weight_args]

    out = pl.pallas_call(
        _fused_backbone_kernel,
        out_shape=jax.ShapeDtypeStruct((n, 1, npad), jnp.float32),
        grid=(n,),
        in_specs=in_specs,
        out_specs=pl.BlockSpec((1, 1, npad), lambda i: (i, 0, 0)),
        scratch_shapes=[pltpu.VMEM((ho + 2, wo + 2, cm), jnp.float32)],
        compiler_params=pltpu.CompilerParams(
            dimension_semantics=("parallel",),          # megacore-shard / pipeline over images
            vmem_limit_bytes=32 * 1024 * 1024,          # explicit budget, safe on v5e/v6e/v7x
        ),
    )(xph, *weight_args)

    return out.reshape(n, npad)[:, :NUM_CLASSES]


# -------------------------- params (deterministic) --------------------------- #

def init_params(key, in_ch=3, stem_ch=32, mid_ch=128, se_ch=32, out_ch=32,
                feat_ch=256, num_classes=NUM_CLASSES, num_classes_pad=NUM_CLASSES_PAD):
    ks = jax.random.split(key, 8)

    def w(k, shape, fan_in, dtype=jnp.bfloat16):
        return (jax.random.normal(k, shape, jnp.float32)
                / jnp.sqrt(float(fan_in))).astype(dtype)

    ones = lambda c: jnp.ones((1, c), jnp.float32)
    zeros = lambda c: jnp.zeros((1, c), jnp.float32)

    p = {}
    p["stem_w"] = w(ks[0], (9, in_ch, stem_ch), 9 * in_ch)            # 3x3 s2 conv, tap-major
    p["stem_scale"], p["stem_bias"] = ones(stem_ch), zeros(stem_ch)   # folded BN
    p["exp_w"] = w(ks[1], (stem_ch, mid_ch), stem_ch)                 # 1x1 expand
    p["exp_scale"], p["exp_bias"] = ones(mid_ch), zeros(mid_ch)
    p["dw_w"] = w(ks[2], (9, mid_ch), 9, dtype=jnp.float32)           # depthwise 3x3 (VPU, f32)
    p["dw_scale"], p["dw_bias"] = ones(mid_ch), zeros(mid_ch)
    p["se1_w"], p["se1_b"] = w(ks[3], (mid_ch, se_ch), mid_ch), zeros(se_ch)
    p["se2_w"], p["se2_b"] = w(ks[4], (se_ch, mid_ch), se_ch), zeros(mid_ch)
    p["proj_w"] = w(ks[5], (mid_ch, out_ch), mid_ch)                  # 1x1 project
    p["proj_scale"], p["proj_bias"] = ones(out_ch), zeros(out_ch)
    p["head_w"] = w(ks[6], (out_ch, feat_ch), out_ch)                 # 1x1 head -> in_features
    p["head_scale"], p["head_bias"] = ones(feat_ch), zeros(feat_ch)
    cls_w = w(ks[7], (feat_ch, num_classes), feat_ch)                 # nn.Linear(in_features, 264)
    p["cls_w"] = jnp.pad(cls_w, ((0, 0), (0, num_classes_pad - num_classes)))
    p["cls_b"] = zeros(num_classes_pad)
    return p


# ---------------------------------- main ------------------------------------- #

if __name__ == "__main__":
    key = jax.random.PRNGKey(0)
    pkey, xkey = jax.random.split(key)
    params = init_params(pkey)

    # small NCHW image batch, like the PyTorch module's `img`
    img = jax.random.normal(xkey, (2, 3, 16, 16), jnp.float32)

    logits = jax.jit(bird_model_forward)(params, img)
    logits = jax.block_until_ready(logits)
    assert logits.shape == (2, NUM_CLASSES), logits.shape
    assert bool(jnp.all(jnp.isfinite(logits)))
    print("KERNEL_OK")
</pallas_src>

<mosaic_0001>
module attributes {stable_mosaic.version = 11 : i64} {
  func.func @_fused_backbone_kernel(%arg0: i32, %arg1: memref<1x4x9x9x3xf32, #tpu.memory_space<vmem>>, %arg2: memref<9x3x32xbf16, #tpu.memory_space<vmem>>, %arg3: memref<1x32xf32, #tpu.memory_space<vmem>>, %arg4: memref<1x32xf32, #tpu.memory_space<vmem>>, %arg5: memref<32x128xbf16, #tpu.memory_space<vmem>>, %arg6: memref<1x128xf32, #tpu.memory_space<vmem>>, %arg7: memref<1x128xf32, #tpu.memory_space<vmem>>, %arg8: memref<9x128xf32, #tpu.memory_space<vmem>>, %arg9: memref<1x128xf32, #tpu.memory_space<vmem>>, %arg10: memref<1x128xf32, #tpu.memory_space<vmem>>, %arg11: memref<128x32xbf16, #tpu.memory_space<vmem>>, %arg12: memref<1x32xf32, #tpu.memory_space<vmem>>, %arg13: memref<32x128xbf16, #tpu.memory_space<vmem>>, %arg14: memref<1x128xf32, #tpu.memory_space<vmem>>, %arg15: memref<128x32xbf16, #tpu.memory_space<vmem>>, %arg16: memref<1x32xf32, #tpu.memory_space<vmem>>, %arg17: memref<1x32xf32, #tpu.memory_space<vmem>>, %arg18: memref<32x256xbf16, #tpu.memory_space<vmem>>, %arg19: memref<1x256xf32, #tpu.memory_space<vmem>>, %arg20: memref<1x256xf32, #tpu.memory_space<vmem>>, %arg21: memref<256x384xbf16, #tpu.memory_space<vmem>>, %arg22: memref<1x384xf32, #tpu.memory_space<vmem>>, %arg23: memref<1x1x384xf32, #tpu.memory_space<vmem>>, %arg24: memref<10x10x128xf32, #tpu.memory_space<vmem>>) attributes {dimension_semantics = [#tpu.dimension_semantics<parallel>], iteration_bounds = array<i64: 2>, scalar_prefetch = 0 : i64, scratch_operands = 1 : i64, tpu.core_type = #tpu.core_type<tc>, window_params = [{transform_indices = @transform_0, window_bounds = array<i64: 1, 4, 9, 9, 3>}, {pipeline_mode = #tpu.pipeline_mode<synchronous>, transform_indices = @transform_1, window_bounds = array<i64: 9, 3, 32>}, {pipeline_mode = #tpu.pipeline_mode<synchronous>, transform_indices = @transform_2, window_bounds = array<i64: 1, 32>}, {pipeline_mode = #tpu.pipeline_mode<synchronous>, transform_indices = @transform_3, window_bounds = array<i64: 1, 32>}, {pipeline_mode = #tpu.pipeline_mode<synchronous>, transform_indices = @transform_4, window_bounds = array<i64: 32, 128>}, {pipeline_mode = #tpu.pipeline_mode<synchronous>, transform_indices = @transform_5, window_bounds = array<i64: 1, 128>}, {pipeline_mode = #tpu.pipeline_mode<synchronous>, transform_indices = @transform_6, window_bounds = array<i64: 1, 128>}, {pipeline_mode = #tpu.pipeline_mode<synchronous>, transform_indices = @transform_7, window_bounds = array<i64: 9, 128>}, {pipeline_mode = #tpu.pipeline_mode<synchronous>, transform_indices = @transform_8, window_bounds = array<i64: 1, 128>}, {pipeline_mode = #tpu.pipeline_mode<synchronous>, transform_indices = @transform_9, window_bounds = array<i64: 1, 128>}, {pipeline_mode = #tpu.pipeline_mode<synchronous>, transform_indices = @transform_10, window_bounds = array<i64: 128, 32>}, {pipeline_mode = #tpu.pipeline_mode<synchronous>, transform_indices = @transform_11, window_bounds = array<i64: 1, 32>}, {pipeline_mode = #tpu.pipeline_mode<synchronous>, transform_indices = @transform_12, window_bounds = array<i64: 32, 128>}, {pipeline_mode = #tpu.pipeline_mode<synchronous>, transform_indices = @transform_13, window_bounds = array<i64: 1, 128>}, {pipeline_mode = #tpu.pipeline_mode<synchronous>, transform_indices = @transform_14, window_bounds = array<i64: 128, 32>}, {pipeline_mode = #tpu.pipeline_mode<synchronous>, transform_indices = @transform_15, window_bounds = array<i64: 1, 32>}, {pipeline_mode = #tpu.pipeline_mode<synchronous>, transform_indices = @transform_16, window_bounds = array<i64: 1, 32>}, {pipeline_mode = #tpu.pipeline_mode<synchronous>, transform_indices = @transform_17, window_bounds = array<i64: 32, 256>}, {pipeline_mode = #tpu.pipeline_mode<synchronous>, transform_indices = @transform_18, window_bounds = array<i64: 1, 256>}, {pipeline_mode = #tpu.pipeline_mode<synchronous>, transform_indices = @transform_19, window_bounds = array<i64: 1, 256>}, {pipeline_mode = #tpu.pipeline_mode<synchronous>, transform_indices = @transform_20, window_bounds = array<i64: 256, 384>}, {pipeline_mode = #tpu.pipeline_mode<synchronous>, transform_indices = @transform_21, window_bounds = array<i64: 1, 384>}, {transform_indices = @transform_22, window_bounds = array<i64: 1, 1, 384>}]} {
    %c0 = arith.constant 0 : index
    %c0_0 = arith.constant 0 : index
    %c0_1 = arith.constant 0 : index
    %c0_2 = arith.constant 0 : index
    %c0_3 = arith.constant 0 : index
    %0 = vector.load %arg1[%c0, %c0_0, %c0_1, %c0_2, %c0_3] : memref<1x4x9x9x3xf32, #tpu.memory_space<vmem>>, vector<1x4x9x9x3xf32>
    %1 = vector.shape_cast %0 : vector<1x4x9x9x3xf32> to vector<4x9x9x3xf32>
    %c0_4 = arith.constant 0 : index
    %c0_5 = arith.constant 0 : index
    %c0_6 = arith.constant 0 : index
    %2 = vector.load %arg2[%c0_4, %c0_5, %c0_6] : memref<9x3x32xbf16, #tpu.memory_space<vmem>>, vector<9x3x32xbf16>
    %cst = arith.constant 0.000000e+00 : f32
    %3 = vector.broadcast %cst : f32 to vector<64x32xf32>
    %4 = vector.extract_strided_slice %1 {offsets = [0, 0, 0, 0], sizes = [1, 8, 8, 3], strides = [1, 1, 1, 1]} : vector<4x9x9x3xf32> to vector<1x8x8x3xf32>
    %5 = vector.shape_cast %4 : vector<1x8x8x3xf32> to vector<8x8x3xf32>
    %6 = vector.shape_cast %5 : vector<8x8x3xf32> to vector<64x3xf32>
    %7 = arith.truncf %6 : vector<64x3xf32> to vector<64x3xbf16>
    %8 = vector.extract_strided_slice %2 {offsets = [0, 0, 0], sizes = [1, 3, 32], strides = [1, 1, 1]} : vector<9x3x32xbf16> to vector<1x3x32xbf16>
    %9 = vector.shape_cast %8 : vector<1x3x32xbf16> to vector<3x32xbf16>
    %cst_7 = arith.constant dense<0.000000e+00> : vector<64x32xf32>
    %10 = tpu.matmul %7, %9, %cst_7 {dimension_numbers = #tpu.dot_dimension_numbers<[1], [0], [0], [1], [0, 0, 1, 1], [], []>} : vector<64x3xbf16>, vector<3x32xbf16>, vector<64x32xf32> -> vector<64x32xf32>
    %11 = arith.addf %3, %10 : vector<64x32xf32>
    %12 = vector.extract_strided_slice %1 {offsets = [1, 0, 0, 0], sizes = [1, 8, 8, 3], strides = [1, 1, 1, 1]} : vector<4x9x9x3xf32> to vector<1x8x8x3xf32>
    %13 = vector.shape_cast %12 : vector<1x8x8x3xf32> to vector<8x8x3xf32>
    %14 = vector.shape_cast %13 : vector<8x8x3xf32> to vector<64x3xf32>
    %15 = arith.truncf %14 : vector<64x3xf32> to vector<64x3xbf16>
    %16 = vector.extract_strided_slice %2 {offsets = [1, 0, 0], sizes = [1, 3, 32], strides = [1, 1, 1]} : vector<9x3x32xbf16> to vector<1x3x32xbf16>
    %17 = vector.shape_cast %16 : vector<1x3x32xbf16> to vector<3x32xbf16>
    %cst_8 = arith.constant dense<0.000000e+00> : vector<64x32xf32>
    %18 = tpu.matmul %15, %17, %cst_8 {dimension_numbers = #tpu.dot_dimension_numbers<[1], [0], [0], [1], [0, 0, 1, 1], [], []>} : vector<64x3xbf16>, vector<3x32xbf16>, vector<64x32xf32> -> vector<64x32xf32>
    %19 = arith.addf %11, %18 : vector<64x32xf32>
    %20 = vector.extract_strided_slice %1 {offsets = [0, 0, 1, 0], sizes = [1, 8, 8, 3], strides = [1, 1, 1, 1]} : vector<4x9x9x3xf32> to vector<1x8x8x3xf32>
    %21 = vector.shape_cast %20 : vector<1x8x8x3xf32> to vector<8x8x3xf32>
    %22 = vector.shape_cast %21 : vector<8x8x3xf32> to vector<64x3xf32>
    %23 = arith.truncf %22 : vector<64x3xf32> to vector<64x3xbf16>
    %24 = vector.extract_strided_slice %2 {offsets = [2, 0, 0], sizes = [1, 3, 32], strides = [1, 1, 1]} : vector<9x3x32xbf16> to vector<1x3x32xbf16>
    %25 = vector.shape_cast %24 : vector<1x3x32xbf16> to vector<3x32xbf16>
    %cst_9 = arith.constant dense<0.000000e+00> : vector<64x32xf32>
    %26 = tpu.matmul %23, %25, %cst_9 {dimension_numbers = #tpu.dot_dimension_numbers<[1], [0], [0], [1], [0, 0, 1, 1], [], []>} : vector<64x3xbf16>, vector<3x32xbf16>, vector<64x32xf32> -> vector<64x32xf32>
    %27 = arith.addf %19, %26 : vector<64x32xf32>
    %28 = vector.extract_strided_slice %1 {offsets = [2, 0, 0, 0], sizes = [1, 8, 8, 3], strides = [1, 1, 1, 1]} : vector<4x9x9x3xf32> to vector<1x8x8x3xf32>
    %29 = vector.shape_cast %28 : vector<1x8x8x3xf32> to vector<8x8x3xf32>
    %30 = vector.shape_cast %29 : vector<8x8x3xf32> to vector<64x3xf32>
    %31 = arith.truncf %30 : vector<64x3xf32> to vector<64x3xbf16>
    %32 = vector.extract_strided_slice %2 {offsets = [3, 0, 0], sizes = [1, 3, 32], strides = [1, 1, 1]} : vector<9x3x32xbf16> to vector<1x3x32xbf16>
    %33 = vector.shape_cast %32 : vector<1x3x32xbf16> to vector<3x32xbf16>
    %cst_10 = arith.constant dense<0.000000e+00> : vector<64x32xf32>
    %34 = tpu.matmul %31, %33, %cst_10 {dimension_numbers = #tpu.dot_dimension_numbers<[1], [0], [0], [1], [0, 0, 1, 1], [], []>} : vector<64x3xbf16>, vector<3x32xbf16>, vector<64x32xf32> -> vector<64x32xf32>
    %35 = arith.addf %27, %34 : vector<64x32xf32>
    %36 = vector.extract_strided_slice %1 {offsets = [3, 0, 0, 0], sizes = [1, 8, 8, 3], strides = [1, 1, 1, 1]} : vector<4x9x9x3xf32> to vector<1x8x8x3xf32>
    %37 = vector.shape_cast %36 : vector<1x8x8x3xf32> to vector<8x8x3xf32>
    %38 = vector.shape_cast %37 : vector<8x8x3xf32> to vector<64x3xf32>
    %39 = arith.truncf %38 : vector<64x3xf32> to vector<64x3xbf16>
    %40 = vector.extract_strided_slice %2 {offsets = [4, 0, 0], sizes = [1, 3, 32], strides = [1, 1, 1]} : vector<9x3x32xbf16> to vector<1x3x32xbf16>
    %41 = vector.shape_cast %40 : vector<1x3x32xbf16> to vector<3x32xbf16>
    %cst_11 = arith.constant dense<0.000000e+00> : vector<64x32xf32>
    %42 = tpu.matmul %39, %41, %cst_11 {dimension_numbers = #tpu.dot_dimension_numbers<[1], [0], [0], [1], [0, 0, 1, 1], [], []>} : vector<64x3xbf16>, vector<3x32xbf16>, vector<64x32xf32> -> vector<64x32xf32>
    %43 = arith.addf %35, %42 : vector<64x32xf32>
    %44 = vector.extract_strided_slice %1 {offsets = [2, 0, 1, 0], sizes = [1, 8, 8, 3], strides = [1, 1, 1, 1]} : vector<4x9x9x3xf32> to vector<1x8x8x3xf32>
    %45 = vector.shape_cast %44 : vector<1x8x8x3xf32> to vector<8x8x3xf32>
    %46 = vector.shape_cast %45 : vector<8x8x3xf32> to vector<64x3xf32>
    %47 = arith.truncf %46 : vector<64x3xf32> to vector<64x3xbf16>
    %48 = vector.extract_strided_slice %2 {offsets = [5, 0, 0], sizes = [1, 3, 32], strides = [1, 1, 1]} : vector<9x3x32xbf16> to vector<1x3x32xbf16>
    %49 = vector.shape_cast %48 : vector<1x3x32xbf16> to vector<3x32xbf16>
    %cst_12 = arith.constant dense<0.000000e+00> : vector<64x32xf32>
    %50 = tpu.matmul %47, %49, %cst_12 {dimension_numbers = #tpu.dot_dimension_numbers<[1], [0], [0], [1], [0, 0, 1, 1], [], []>} : vector<64x3xbf16>, vector<3x32xbf16>, vector<64x32xf32> -> vector<64x32xf32>
    %51 = arith.addf %43, %50 : vector<64x32xf32>
    %52 = vector.extract_strided_slice %1 {offsets = [0, 1, 0, 0], sizes = [1, 8, 8, 3], strides = [1, 1, 1, 1]} : vector<4x9x9x3xf32> to vector<1x8x8x3xf32>
    %53 = vector.shape_cast %52 : vector<1x8x8x3xf32> to vector<8x8x3xf32>
    %54 = vector.shape_cast %53 : vector<8x8x3xf32> to vector<64x3xf32>
    %55 = arith.truncf %54 : vector<64x3xf32> to vector<64x3xbf16>
    %56 = vector.extract_strided_slice %2 {offsets = [6, 0, 0], sizes = [1, 3, 32], strides = [1, 1, 1]} : vector<9x3x32xbf16> to vector<1x3x32xbf16>
    %57 = vector.shape_cast %56 : vector<1x3x32xbf16> to vector<3x32xbf16>
    %cst_13 = arith.constant dense<0.000000e+00> : vector<64x32xf32>
    %58 = tpu.matmul %55, %57, %cst_13 {dimension_numbers = #tpu.dot_dimension_numbers<[1], [0], [0], [1], [0, 0, 1, 1], [], []>} : vector<64x3xbf16>, vector<3x32xbf16>, vector<64x32xf32> -> vector<64x32xf32>
    %59 = arith.addf %51, %58 : vector<64x32xf32>
    %60 = vector.extract_strided_slice %1 {offsets = [1, 1, 0, 0], sizes = [1, 8, 8, 3], strides = [1, 1, 1, 1]} : vector<4x9x9x3xf32> to vector<1x8x8x3xf32>
    %61 = vector.shape_cast %60 : vector<1x8x8x3xf32> to vector<8x8x3xf32>
    %62 = vector.shape_cast %61 : vector<8x8x3xf32> to vector<64x3xf32>
    %63 = arith.truncf %62 : vector<64x3xf32> to vector<64x3xbf16>
    %64 = vector.extract_strided_slice %2 {offsets = [7, 0, 0], sizes = [1, 3, 32], strides = [1, 1, 1]} : vector<9x3x32xbf16> to vector<1x3x32xbf16>
    %65 = vector.shape_cast %64 : vector<1x3x32xbf16> to vector<3x32xbf16>
    %cst_14 = arith.constant dense<0.000000e+00> : vector<64x32xf32>
    %66 = tpu.matmul %63, %65, %cst_14 {dimension_numbers = #tpu.dot_dimension_numbers<[1], [0], [0], [1], [0, 0, 1, 1], [], []>} : vector<64x3xbf16>, vector<3x32xbf16>, vector<64x32xf32> -> vector<64x32xf32>
    %67 = arith.addf %59, %66 : vector<64x32xf32>
    %68 = vector.extract_strided_slice %1 {offsets = [0, 1, 1, 0], sizes = [1, 8, 8, 3], strides = [1, 1, 1, 1]} : vector<4x9x9x3xf32> to vector<1x8x8x3xf32>
    %69 = vector.shape_cast %68 : vector<1x8x8x3xf32> to vector<8x8x3xf32>
    %70 = vector.shape_cast %69 : vector<8x8x3xf32> to vector<64x3xf32>
    %71 = arith.truncf %70 : vector<64x3xf32> to vector<64x3xbf16>
    %72 = vector.extract_strided_slice %2 {offsets = [8, 0, 0], sizes = [1, 3, 32], strides = [1, 1, 1]} : vector<9x3x32xbf16> to vector<1x3x32xbf16>
    %73 = vector.shape_cast %72 : vector<1x3x32xbf16> to vector<3x32xbf16>
    %cst_15 = arith.constant dense<0.000000e+00> : vector<64x32xf32>
    %74 = tpu.matmul %71, %73, %cst_15 {dimension_numbers = #tpu.dot_dimension_numbers<[1], [0], [0], [1], [0, 0, 1, 1], [], []>} : vector<64x3xbf16>, vector<3x32xbf16>, vector<64x32xf32> -> vector<64x32xf32>
    %75 = arith.addf %67, %74 : vector<64x32xf32>
    %c0_16 = arith.constant 0 : index
    %c0_17 = arith.constant 0 : index
    %76 = vector.load %arg3[%c0_16, %c0_17] : memref<1x32xf32, #tpu.memory_space<vmem>>, vector<1x32xf32>
    %77 = vector.broadcast %76 : vector<1x32xf32> to vector<64x32xf32>
    %78 = arith.mulf %75, %77 : vector<64x32xf32>
    %c0_18 = arith.constant 0 : index
    %c0_19 = arith.constant 0 : index
    %79 = vector.load %arg4[%c0_18, %c0_19] : memref<1x32xf32, #tpu.memory_space<vmem>>, vector<1x32xf32>
    %80 = vector.broadcast %79 : vector<1x32xf32> to vector<64x32xf32>
    %81 = arith.addf %78, %80 : vector<64x32xf32>
    %82 = arith.negf %81 : vector<64x32xf32>
    %83 = math.exp %82 : vector<64x32xf32>
    %cst_20 = arith.constant 1.000000e+00 : f32
    %84 = vector.broadcast %cst_20 : f32 to vector<64x32xf32>
    %85 = arith.addf %84, %83 : vector<64x32xf32>
    %86 = arith.divf %84, %85 : vector<64x32xf32>
    %87 = arith.mulf %81, %86 : vector<64x32xf32>
    %88 = arith.truncf %87 : vector<64x32xf32> to vector<64x32xbf16>
    %c0_21 = arith.constant 0 : index
    %c0_22 = arith.constant 0 : index
    %89 = vector.load %arg5[%c0_21, %c0_22] : memref<32x128xbf16, #tpu.memory_space<vmem>>, vector<32x128xbf16>
    %cst_23 = arith.constant dense<0.000000e+00> : vector<64x128xf32>
    %90 = tpu.matmul %88, %89, %cst_23 {dimension_numbers = #tpu.dot_dimension_numbers<[1], [0], [0], [1], [0, 0, 1, 1], [], []>} : vector<64x32xbf16>, vector<32x128xbf16>, vector<64x128xf32> -> vector<64x128xf32>
    %c0_24 = arith.constant 0 : index
    %c0_25 = arith.constant 0 : index
    %91 = vector.load %arg6[%c0_24, %c0_25] : memref<1x128xf32, #tpu.memory_space<vmem>>, vector<1x128xf32>
    %92 = vector.broadcast %91 : vector<1x128xf32> to vector<64x128xf32>
    %93 = arith.mulf %90, %92 : vector<64x128xf32>
    %c0_26 = arith.constant 0 : index
    %c0_27 = arith.constant 0 : index
    %94 = vector.load %arg7[%c0_26, %c0_27] : memref<1x128xf32, #tpu.memory_space<vmem>>, vector<1x128xf32>
    %95 = vector.broadcast %94 : vector<1x128xf32> to vector<64x128xf32>
    %96 = arith.addf %93, %95 : vector<64x128xf32>
    %97 = arith.negf %96 : vector<64x128xf32>
    %98 = math.exp %97 : vector<64x128xf32>
    %cst_28 = arith.constant 1.000000e+00 : f32
    %99 = vector.broadcast %cst_28 : f32 to vector<64x128xf32>
    %100 = arith.addf %99, %98 : vector<64x128xf32>
    %101 = arith.divf %99, %100 : vector<64x128xf32>
    %102 = arith.mulf %96, %101 : vector<64x128xf32>
    %cst_29 = arith.constant 0.000000e+00 : f32
    %103 = vector.broadcast %cst_29 : f32 to vector<10x10x128xf32>
    %c0_30 = arith.constant 0 : index
    %c0_31 = arith.constant 0 : index
    %c0_32 = arith.constant 0 : index
    %104 = vector.load %arg24[%c0_30, %c0_31, %c0_32] : memref<10x10x128xf32, #tpu.memory_space<vmem>>, vector<10x10x128xf32>
    tpu.vector_store %arg24[%c0_30, %c0_31, %c0_32], %103 {strides = array<i32>} : memref<10x10x128xf32, #tpu.memory_space<vmem>>, vector<10x10x128xf32>,
    %105 = vector.shape_cast %102 : vector<64x128xf32> to vector<8x8x128xf32>
    %c1 = arith.constant 1 : index
    %c1_33 = arith.constant 1 : index
    %c0_34 = arith.constant 0 : index
    %106 = vector.load %arg24[%c1, %c1_33, %c0_34] : memref<10x10x128xf32, #tpu.memory_space<vmem>>, vector<8x8x128xf32>
    tpu.vector_store %arg24[%c1, %c1_33, %c0_34], %105 {strides = array<i32>} : memref<10x10x128xf32, #tpu.memory_space<vmem>>, vector<8x8x128xf32>,
    %c0_35 = arith.constant 0 : index
    %c0_36 = arith.constant 0 : index
    %107 = vector.load %arg8[%c0_35, %c0_36] : memref<9x128xf32, #tpu.memory_space<vmem>>, vector<9x128xf32>
    %cst_37 = arith.constant 0.000000e+00 : f32
    %108 = vector.broadcast %cst_37 : f32 to vector<8x8x128xf32>
    %c0_38 = arith.constant 0 : index
    %c0_39 = arith.constant 0 : index
    %c0_40 = arith.constant 0 : index
    %109 = vector.load %arg24[%c0_38, %c0_39, %c0_40] : memref<10x10x128xf32, #tpu.memory_space<vmem>>, vector<8x8x128xf32>
    %110 = vector.extract_strided_slice %107 {offsets = [0, 0], sizes = [1, 128], strides = [1, 1]} : vector<9x128xf32> to vector<1x128xf32>
    %111 = vector.shape_cast %110 : vector<1x128xf32> to vector<128xf32>
    %112 = vector.shape_cast %111 : vector<128xf32> to vector<1x1x128xf32>
    %113 = vector.broadcast %112 : vector<1x1x128xf32> to vector<8x8x128xf32>
    %114 = arith.mulf %109, %113 : vector<8x8x128xf32>
    %115 = arith.addf %108, %114 : vector<8x8x128xf32>
    %c0_41 = arith.constant 0 : index
    %c1_42 = arith.constant 1 : index
    %c0_43 = arith.constant 0 : index
    %116 = vector.load %arg24[%c0_41, %c1_42, %c0_43] : memref<10x10x128xf32, #tpu.memory_space<vmem>>, vector<8x8x128xf32>
    %117 = vector.extract_strided_slice %107 {offsets = [1, 0], sizes = [1, 128], strides = [1, 1]} : vector<9x128xf32> to vector<1x128xf32>
    %118 = vector.shape_cast %117 : vector<1x128xf32> to vector<128xf32>
    %119 = vector.shape_cast %118 : vector<128xf32> to vector<1x1x128xf32>
    %120 = vector.broadcast %119 : vector<1x1x128xf32> to vector<8x8x128xf32>
    %121 = arith.mulf %116, %120 : vector<8x8x128xf32>
    %122 = arith.addf %115, %121 : vector<8x8x128xf32>
    %c0_44 = arith.constant 0 : index
    %c2 = arith.constant 2 : index
    %c0_45 = arith.constant 0 : index
    %123 = vector.load %arg24[%c0_44, %c2, %c0_45] : memref<10x10x128xf32, #tpu.memory_space<vmem>>, vector<8x8x128xf32>
    %124 = vector.extract_strided_slice %107 {offsets = [2, 0], sizes = [1, 128], strides = [1, 1]} : vector<9x128xf32> to vector<1x128xf32>
    %125 = vector.shape_cast %124 : vector<1x128xf32> to vector<128xf32>
    %126 = vector.shape_cast %125 : vector<128xf32> to vector<1x1x128xf32>
    %127 = vector.broadcast %126 : vector<1x1x128xf32> to vector<8x8x128xf32>
    %128 = arith.mulf %123, %127 : vector<8x8x128xf32>
    %129 = arith.addf %122, %128 : vector<8x8x128xf32>
    %c1_46 = arith.constant 1 : index
    %c0_47 = arith.constant 0 : index
    %c0_48 = arith.constant 0 : index
    %130 = vector.load %arg24[%c1_46, %c0_47, %c0_48] : memref<10x10x128xf32, #tpu.memory_space<vmem>>, vector<8x8x128xf32>
    %131 = vector.extract_strided_slice %107 {offsets = [3, 0], sizes = [1, 128], strides = [1, 1]} : vector<9x128xf32> to vector<1x128xf32>
    %132 = vector.shape_cast %131 : vector<1x128xf32> to vector<128xf32>
    %133 = vector.shape_cast %132 : vector<128xf32> to vector<1x1x128xf32>
    %134 = vector.broadcast %133 : vector<1x1x128xf32> to vector<8x8x128xf32>
    %135 = arith.mulf %130, %134 : vector<8x8x128xf32>
    %136 = arith.addf %129, %135 : vector<8x8x128xf32>
    %c1_49 = arith.constant 1 : index
    %c1_50 = arith.constant 1 : index
    %c0_51 = arith.constant 0 : index
    %137 = vector.load %arg24[%c1_49, %c1_50, %c0_51] : memref<10x10x128xf32, #tpu.memory_space<vmem>>, vector<8x8x128xf32>
    %138 = vector.extract_strided_slice %107 {offsets = [4, 0], sizes = [1, 128], strides = [1, 1]} : vector<9x128xf32> to vector<1x128xf32>
    %139 = vector.shape_cast %138 : vector<1x128xf32> to vector<128xf32>
    %140 = vector.shape_cast %139 : vector<128xf32> to vector<1x1x128xf32>
    %141 = vector.broadcast %140 : vector<1x1x128xf32> to vector<8x8x128xf32>
    %142 = arith.mulf %137, %141 : vector<8x8x128xf32>
    %143 = arith.addf %136, %142 : vector<8x8x128xf32>
    %c1_52 = arith.constant 1 : index
    %c2_53 = arith.constant 2 : index
    %c0_54 = arith.constant 0 : index
    %144 = vector.load %arg24[%c1_52, %c2_53, %c0_54] : memref<10x10x128xf32, #tpu.memory_space<vmem>>, vector<8x8x128xf32>
    %145 = vector.extract_strided_slice %107 {offsets = [5, 0], sizes = [1, 128], strides = [1, 1]} : vector<9x128xf32> to vector<1x128xf32>
    %146 = vector.shape_cast %145 : vector<1x128xf32> to vector<128xf32>
    %147 = vector.shape_cast %146 : vector<128xf32> to vector<1x1x128xf32>
    %148 = vector.broadcast %147 : vector<1x1x128xf32> to vector<8x8x128xf32>
    %149 = arith.mulf %144, %148 : vector<8x8x128xf32>
    %150 = arith.addf %143, %149 : vector<8x8x128xf32>
    %c2_55 = arith.constant 2 : index
    %c0_56 = arith.constant 0 : index
    %c0_57 = arith.constant 0 : index
    %151 = vector.load %arg24[%c2_55, %c0_56, %c0_57] : memref<10x10x128xf32, #tpu.memory_space<vmem>>, vector<8x8x128xf32>
    %152 = vector.extract_strided_slice %107 {offsets = [6, 0], sizes = [1, 128], strides = [1, 1]} : vector<9x128xf32> to vector<1x128xf32>
    %153 = vector.shape_cast %152 : vector<1x128xf32> to vector<128xf32>
    %154 = vector.shape_cast %153 : vector<128xf32> to vector<1x1x128xf32>
    %155 = vector.broadcast %154 : vector<1x1x128xf32> to vector<8x8x128xf32>
    %156 = arith.mulf %151, %155 : vector<8x8x128xf32>
    %157 = arith.addf %150, %156 : vector<8x8x128xf32>
    %c2_58 = arith.constant 2 : index
    %c1_59 = arith.constant 1 : index
    %c0_60 = arith.constant 0 : index
    %158 = vector.load %arg24[%c2_58, %c1_59, %c0_60] : memref<10x10x128xf32, #tpu.memory_space<vmem>>, vector<8x8x128xf32>
    %159 = vector.extract_strided_slice %107 {offsets = [7, 0], sizes = [1, 128], strides = [1, 1]} : vector<9x128xf32> to vector<1x128xf32>
    %160 = vector.shape_cast %159 : vector<1x128xf32> to vector<128xf32>
    %161 = vector.shape_cast %160 : vector<128xf32> to vector<1x1x128xf32>
    %162 = vector.broadcast %161 : vector<1x1x128xf32> to vector<8x8x128xf32>
    %163 = arith.mulf %158, %162 : vector<8x8x128xf32>
    %164 = arith.addf %157, %163 : vector<8x8x128xf32>
    %c2_61 = arith.constant 2 : index
    %c2_62 = arith.constant 2 : index
    %c0_63 = arith.constant 0 : index
    %165 = vector.load %arg24[%c2_61, %c2_62, %c0_63] : memref<10x10x128xf32, #tpu.memory_space<vmem>>, vector<8x8x128xf32>
    %166 = vector.extract_strided_slice %107 {offsets = [8, 0], sizes = [1, 128], strides = [1, 1]} : vector<9x128xf32> to vector<1x128xf32>
    %167 = vector.shape_cast %166 : vector<1x128xf32> to vector<128xf32>
    %168 = vector.shape_cast %167 : vector<128xf32> to vector<1x1x128xf32>
    %169 = vector.broadcast %168 : vector<1x1x128xf32> to vector<8x8x128xf32>
    %170 = arith.mulf %165, %169 : vector<8x8x128xf32>
    %171 = arith.addf %164, %170 : vector<8x8x128xf32>
    %c0_64 = arith.constant 0 : index
    %c0_65 = arith.constant 0 : index
    %172 = vector.load %arg9[%c0_64, %c0_65] : memref<1x128xf32, #tpu.memory_space<vmem>>, vector<1x128xf32>
    %173 = vector.shape_cast %172 : vector<1x128xf32> to vector<1x1x128xf32>
    %174 = vector.broadcast %173 : vector<1x1x128xf32> to vector<8x8x128xf32>
    %175 = arith.mulf %171, %174 : vector<8x8x128xf32>
    %c0_66 = arith.constant 0 : index
    %c0_67 = arith.constant 0 : index
    %176 = vector.load %arg10[%c0_66, %c0_67] : memref<1x128xf32, #tpu.memory_space<vmem>>, vector<1x128xf32>
    %177 = vector.shape_cast %176 : vector<1x128xf32> to vector<1x1x128xf32>
    %178 = vector.broadcast %177 : vector<1x1x128xf32> to vector<8x8x128xf32>
    %179 = arith.addf %175, %178 : vector<8x8x128xf32>
    %180 = arith.negf %179 : vector<8x8x128xf32>
    %181 = math.exp %180 : vector<8x8x128xf32>
    %cst_68 = arith.constant 1.000000e+00 : f32
    %182 = vector.broadcast %cst_68 : f32 to vector<8x8x128xf32>
    %183 = arith.addf %182, %181 : vector<8x8x128xf32>
    %184 = arith.divf %182, %183 : vector<8x8x128xf32>
    %185 = arith.mulf %179, %184 : vector<8x8x128xf32>
    %186 = vector.shape_cast %185 : vector<8x8x128xf32> to vector<64x128xf32>
    %cst_69 = arith.constant dense<0.000000e+00> : vector<128xf32>
    %187 = vector.multi_reduction <add>, %186, %cst_69 [0] : vector<64x128xf32> to vector<128xf32>
    %188 = vector.shape_cast %187 : vector<128xf32> to vector<1x128xf32>
    %cst_70 = arith.constant 6.400000e+01 : f32
    %189 = vector.broadcast %cst_70 : f32 to vector<1x128xf32>
    %190 = arith.divf %188, %189 : vector<1x128xf32>
    %191 = arith.truncf %190 : vector<1x128xf32> to vector<1x128xbf16>
    %c0_71 = arith.constant 0 : index
    %c0_72 = arith.constant 0 : index
    %192 = vector.load %arg11[%c0_71, %c0_72] : memref<128x32xbf16, #tpu.memory_space<vmem>>, vector<128x32xbf16>
    %cst_73 = arith.constant dense<0.000000e+00> : vector<1x32xf32>
    %193 = tpu.matmul %191, %192, %cst_73 {dimension_numbers = #tpu.dot_dimension_numbers<[1], [0], [0], [1], [0, 0, 1, 1], [], []>} : vector<1x128xbf16>, vector<128x32xbf16>, vector<1x32xf32> -> vector<1x32xf32>
    %c0_74 = arith.constant 0 : index
    %c0_75 = arith.constant 0 : index
    %194 = vector.load %arg12[%c0_74, %c0_75] : memref<1x32xf32, #tpu.memory_space<vmem>>, vector<1x32xf32>
    %195 = arith.addf %193, %194 : vector<1x32xf32>
    %196 = arith.negf %195 : vector<1x32xf32>
    %197 = math.exp %196 : vector<1x32xf32>
    %cst_76 = arith.constant 1.000000e+00 : f32
    %198 = vector.broadcast %cst_76 : f32 to vector<1x32xf32>
    %199 = arith.addf %198, %197 : vector<1x32xf32>
    %200 = arith.divf %198, %199 : vector<1x32xf32>
    %201 = arith.mulf %195, %200 : vector<1x32xf32>
    %202 = arith.truncf %201 : vector<1x32xf32> to vector<1x32xbf16>
    %c0_77 = arith.constant 0 : index
    %c0_78 = arith.constant 0 : index
    %203 = vector.load %arg13[%c0_77, %c0_78] : memref<32x128xbf16, #tpu.memory_space<vmem>>, vector<32x128xbf16>
    %cst_79 = arith.constant dense<0.000000e+00> : vector<1x128xf32>
    %204 = tpu.matmul %202, %203, %cst_79 {dimension_numbers = #tpu.dot_dimension_numbers<[1], [0], [0], [1], [0, 0, 1, 1], [], []>} : vector<1x32xbf16>, vector<32x128xbf16>, vector<1x128xf32> -> vector<1x128xf32>
    %c0_80 = arith.constant 0 : index
    %c0_81 = arith.constant 0 : index
    %205 = vector.load %arg14[%c0_80, %c0_81] : memref<1x128xf32, #tpu.memory_space<vmem>>, vector<1x128xf32>
    %206 = arith.addf %204, %205 : vector<1x128xf32>
    %207 = arith.negf %206 : vector<1x128xf32>
    %208 = math.exp %207 : vector<1x128xf32>
    %cst_82 = arith.constant 1.000000e+00 : f32
    %209 = vector.broadcast %cst_82 : f32 to vector<1x128xf32>
    %210 = arith.addf %209, %208 : vector<1x128xf32>
    %211 = arith.divf %209, %210 : vector<1x128xf32>
    %212 = vector.broadcast %211 : vector<1x128xf32> to vector<64x128xf32>
    %213 = arith.mulf %186, %212 : vector<64x128xf32>
    %214 = arith.truncf %213 : vector<64x128xf32> to vector<64x128xbf16>
    %c0_83 = arith.constant 0 : index
    %c0_84 = arith.constant 0 : index
    %215 = vector.load %arg15[%c0_83, %c0_84] : memref<128x32xbf16, #tpu.memory_space<vmem>>, vector<128x32xbf16>
    %cst_85 = arith.constant dense<0.000000e+00> : vector<64x32xf32>
    %216 = tpu.matmul %214, %215, %cst_85 {dimension_numbers = #tpu.dot_dimension_numbers<[1], [0], [0], [1], [0, 0, 1, 1], [], []>} : vector<64x128xbf16>, vector<128x32xbf16>, vector<64x32xf32> -> vector<64x32xf32>
    %c0_86 = arith.constant 0 : index
    %c0_87 = arith.constant 0 : index
    %217 = vector.load %arg16[%c0_86, %c0_87] : memref<1x32xf32, #tpu.memory_space<vmem>>, vector<1x32xf32>
    %218 = vector.broadcast %217 : vector<1x32xf32> to vector<64x32xf32>
    %219 = arith.mulf %216, %218 : vector<64x32xf32>
    %c0_88 = arith.constant 0 : index
    %c0_89 = arith.constant 0 : index
    %220 = vector.load %arg17[%c0_88, %c0_89] : memref<1x32xf32, #tpu.memory_space<vmem>>, vector<1x32xf32>
    %221 = vector.broadcast %220 : vector<1x32xf32> to vector<64x32xf32>
    %222 = arith.addf %219, %221 : vector<64x32xf32>
    %223 = arith.truncf %222 : vector<64x32xf32> to vector<64x32xbf16>
    %c0_90 = arith.constant 0 : index
    %c0_91 = arith.constant 0 : index
    %224 = vector.load %arg18[%c0_90, %c0_91] : memref<32x256xbf16, #tpu.memory_space<vmem>>, vector<32x256xbf16>
    %cst_92 = arith.constant dense<0.000000e+00> : vector<64x256xf32>
    %225 = tpu.matmul %223, %224, %cst_92 {dimension_numbers = #tpu.dot_dimension_numbers<[1], [0], [0], [1], [0, 0, 1, 1], [], []>} : vector<64x32xbf16>, vector<32x256xbf16>, vector<64x256xf32> -> vector<64x256xf32>
    %c0_93 = arith.constant 0 : index
    %c0_94 = arith.constant 0 : index
    %226 = vector.load %arg19[%c0_93, %c0_94] : memref<1x256xf32, #tpu.memory_space<vmem>>, vector<1x256xf32>
    %227 = vector.broadcast %226 : vector<1x256xf32> to vector<64x256xf32>
    %228 = arith.mulf %225, %227 : vector<64x256xf32>
    %c0_95 = arith.constant 0 : index
    %c0_96 = arith.constant 0 : index
    %229 = vector.load %arg20[%c0_95, %c0_96] : memref<1x256xf32, #tpu.memory_space<vmem>>, vector<1x256xf32>
    %230 = vector.broadcast %229 : vector<1x256xf32> to vector<64x256xf32>
    %231 = arith.addf %228, %230 : vector<64x256xf32>
    %232 = arith.negf %231 : vector<64x256xf32>
    %233 = math.exp %232 : vector<64x256xf32>
    %cst_97 = arith.constant 1.000000e+00 : f32
    %234 = vector.broadcast %cst_97 : f32 to vector<64x256xf32>
    %235 = arith.addf %234, %233 : vector<64x256xf32>
    %236 = arith.divf %234, %235 : vector<64x256xf32>
    %237 = arith.mulf %231, %236 : vector<64x256xf32>
    %cst_98 = arith.constant dense<0.000000e+00> : vector<256xf32>
    %238 = vector.multi_reduction <add>, %237, %cst_98 [0] : vector<64x256xf32> to vector<256xf32>
    %239 = vector.shape_cast %238 : vector<256xf32> to vector<1x256xf32>
    %cst_99 = arith.constant 6.400000e+01 : f32
    %240 = vector.broadcast %cst_99 : f32 to vector<1x256xf32>
    %241 = arith.divf %239, %240 : vector<1x256xf32>
    %242 = arith.truncf %241 : vector<1x256xf32> to vector<1x256xbf16>
    %c0_100 = arith.constant 0 : index
    %c0_101 = arith.constant 0 : index
    %243 = vector.load %arg21[%c0_100, %c0_101] : memref<256x384xbf16, #tpu.memory_space<vmem>>, vector<256x384xbf16>
    %cst_102 = arith.constant dense<0.000000e+00> : vector<1x384xf32>
    %244 = tpu.matmul %242, %243, %cst_102 {dimension_numbers = #tpu.dot_dimension_numbers<[1], [0], [0], [1], [0, 0, 1, 1], [], []>} : vector<1x256xbf16>, vector<256x384xbf16>, vector<1x384xf32> -> vector<1x384xf32>
    %c0_103 = arith.constant 0 : index
    %c0_104 = arith.constant 0 : index
    %245 = vector.load %arg22[%c0_103, %c0_104] : memref<1x384xf32, #tpu.memory_space<vmem>>, vector<1x384xf32>
    %246 = arith.addf %244, %245 : vector<1x384xf32>
    %247 = vector.shape_cast %246 : vector<1x384xf32> to vector<1x1x384xf32>
    %c0_105 = arith.constant 0 : index
    %c0_106 = arith.constant 0 : index
    %c0_107 = arith.constant 0 : index
    %248 = vector.load %arg23[%c0_105, %c0_106, %c0_107] : memref<1x1x384xf32, #tpu.memory_space<vmem>>, vector<1x1x384xf32>
    tpu.vector_store %arg23[%c0_105, %c0_106, %c0_107], %247 {strides = array<i32>} : memref<1x1x384xf32, #tpu.memory_space<vmem>>, vector<1x1x384xf32>,
    return
  }
  func.func @transform_0(%arg0: i32) -> (i32, i32, i32, i32, i32) {
    %c0_i32 = arith.constant 0 : i32
    %c0_i32_0 = arith.constant 0 : i32
    %c0_i32_1 = arith.constant 0 : i32
    %c0_i32_2 = arith.constant 0 : i32
    %c0_i32_3 = arith.constant 0 : i32
    return %arg0, %c0_i32, %c0_i32_0, %c0_i32_1, %c0_i32_2 : i32, i32, i32, i32, i32
  }
  func.func @transform_1(%arg0: i32) -> (i32, i32, i32) {
    %c0_i32 = arith.constant 0 : i32
    %c0_i32_0 = arith.constant 0 : i32
    %c0_i32_1 = arith.constant 0 : i32
    %c0_i32_2 = arith.constant 0 : i32
    return %c0_i32, %c0_i32_0, %c0_i32_1 : i32, i32, i32
  }
  func.func @transform_2(%arg0: i32) -> (i32, i32) {
    %c0_i32 = arith.constant 0 : i32
    %c0_i32_0 = arith.constant 0 : i32
    %c0_i32_1 = arith.constant 0 : i32
    return %c0_i32, %c0_i32_0 : i32, i32
  }
  func.func @transform_3(%arg0: i32) -> (i32, i32) {
    %c0_i32 = arith.constant 0 : i32
    %c0_i32_0 = arith.constant 0 : i32
    %c0_i32_1 = arith.constant 0 : i32
    return %c0_i32, %c0_i32_0 : i32, i32
  }
  func.func @transform_4(%arg0: i32) -> (i32, i32) {
    %c0_i32 = arith.constant 0 : i32
    %c0_i32_0 = arith.constant 0 : i32
    %c0_i32_1 = arith.constant 0 : i32
    return %c0_i32, %c0_i32_0 : i32, i32
  }
  func.func @transform_5(%arg0: i32) -> (i32, i32) {
    %c0_i32 = arith.constant 0 : i32
    %c0_i32_0 = arith.constant 0 : i32
    %c0_i32_1 = arith.constant 0 : i32
    return %c0_i32, %c0_i32_0 : i32, i32
  }
  func.func @transform_6(%arg0: i32) -> (i32, i32) {
    %c0_i32 = arith.constant 0 : i32
    %c0_i32_0 = arith.constant 0 : i32
    %c0_i32_1 = arith.constant 0 : i32
    return %c0_i32, %c0_i32_0 : i32, i32
  }
  func.func @transform_7(%arg0: i32) -> (i32, i32) {
    %c0_i32 = arith.constant 0 : i32
    %c0_i32_0 = arith.constant 0 : i32
    %c0_i32_1 = arith.constant 0 : i32
    return %c0_i32, %c0_i32_0 : i32, i32
  }
  func.func @transform_8(%arg0: i32) -> (i32, i32) {
    %c0_i32 = arith.constant 0 : i32
    %c0_i32_0 = arith.constant 0 : i32
    %c0_i32_1 = arith.constant 0 : i32
    return %c0_i32, %c0_i32_0 : i32, i32
  }
  func.func @transform_9(%arg0: i32) -> (i32, i32) {
    %c0_i32 = arith.constant 0 : i32
    %c0_i32_0 = arith.constant 0 : i32
    %c0_i32_1 = arith.constant 0 : i32
    return %c0_i32, %c0_i32_0 : i32, i32
  }
  func.func @transform_10(%arg0: i32) -> (i32, i32) {
    %c0_i32 = arith.constant 0 : i32
    %c0_i32_0 = arith.constant 0 : i32
    %c0_i32_1 = arith.constant 0 : i32
    return %c0_i32, %c0_i32_0 : i32, i32
  }
  func.func @transform_11(%arg0: i32) -> (i32, i32) {
    %c0_i32 = arith.constant 0 : i32
    %c0_i32_0 = arith.constant 0 : i32
    %c0_i32_1 = arith.constant 0 : i32
    return %c0_i32, %c0_i32_0 : i32, i32
  }
  func.func @transform_12(%arg0: i32) -> (i32, i32) {
    %c0_i32 = arith.constant 0 : i32
    %c0_i32_0 = arith.constant 0 : i32
    %c0_i32_1 = arith.constant 0 : i32
    return %c0_i32, %c0_i32_0 : i32, i32
  }
  func.func @transform_13(%arg0: i32) -> (i32, i32) {
    %c0_i32 = arith.constant 0 : i32
    %c0_i32_0 = arith.constant 0 : i32
    %c0_i32_1 = arith.constant 0 : i32
    return %c0_i32, %c0_i32_0 : i32, i32
  }
  func.func @transform_14(%arg0: i32) -> (i32, i32) {
    %c0_i32 = arith.constant 0 : i32
    %c0_i32_0 = arith.constant 0 : i32
    %c0_i32_1 = arith.constant 0 : i32
    return %c0_i32, %c0_i32_0 : i32, i32
  }
  func.func @transform_15(%arg0: i32) -> (i32, i32) {
    %c0_i32 = arith.constant 0 : i32
    %c0_i32_0 = arith.constant 0 : i32
    %c0_i32_1 = arith.constant 0 : i32
    return %c0_i32, %c0_i32_0 : i32, i32
  }
  func.func @transform_16(%arg0: i32) -> (i32, i32) {
    %c0_i32 = arith.constant 0 : i32
    %c0_i32_0 = arith.constant 0 : i32
    %c0_i32_1 = arith.constant 0 : i32
    return %c0_i32, %c0_i32_0 : i32, i32
  }
  func.func @transform_17(%arg0: i32) -> (i32, i32) {
    %c0_i32 = arith.constant 0 : i32
    %c0_i32_0 = arith.constant 0 : i32
    %c0_i32_1 = arith.constant 0 : i32
    return %c0_i32, %c0_i32_0 : i32, i32
  }
  func.func @transform_18(%arg0: i32) -> (i32, i32) {
    %c0_i32 = arith.constant 0 : i32
    %c0_i32_0 = arith.constant 0 : i32
    %c0_i32_1 = arith.constant 0 : i32
    return %c0_i32, %c0_i32_0 : i32, i32
  }
  func.func @transform_19(%arg0: i32) -> (i32, i32) {
    %c0_i32 = arith.constant 0 : i32
    %c0_i32_0 = arith.constant 0 : i32
    %c0_i32_1 = arith.constant 0 : i32
    return %c0_i32, %c0_i32_0 : i32, i32
  }
  func.func @transform_20(%arg0: i32) -> (i32, i32) {
    %c0_i32 = arith.constant 0 : i32
    %c0_i32_0 = arith.constant 0 : i32
    %c0_i32_1 = arith.constant 0 : i32
    return %c0_i32, %c0_i32_0 : i32, i32
  }
  func.func @transform_21(%arg0: i32) -> (i32, i32) {
    %c0_i32 = arith.constant 0 : i32
    %c0_i32_0 = arith.constant 0 : i32
    %c0_i32_1 = arith.constant 0 : i32
    return %c0_i32, %c0_i32_0 : i32, i32
  }
  func.func @transform_22(%arg0: i32) -> (i32, i32, i32) {
    %c0_i32 = arith.constant 0 : i32
    %c0_i32_0 = arith.constant 0 : i32
    %c0_i32_1 = arith.constant 0 : i32
    return %arg0, %c0_i32, %c0_i32_0 : i32, i32, i32
  }
}

</mosaic_0001>

<bundles_post_ra>
// kernel: bird_model_forward.1
= control target key start
LH: loop header
LB: loop body
LE: loop exit
PB: predicated region body
PF: predicated region fallthrough
CT: control target
= control target key end

     0   :  { %s5321_s0 = inlined_call_operand.vmem [shape: f32[2,4,9,9,3], index: 0, kind: input, shape index: {}]   ;;  %s5322_s1 = inlined_call_operand.vmem [shape: bf16[9,3,32], index: 1, kind: input, shape index: {}]   ;;  %s5323_s2 = inlined_call_operand.vmem [shape: f32[1,32], index: 2, kind: input, shape index: {}]   ;;  %s5324_s3 = inlined_call_operand.vmem [shape: f32[1,32], index: 3, kind: input, shape index: {}]   ;;  %s5325_s4 = inlined_call_operand.vmem [shape: bf16[32,128], index: 4, kind: input, shape index: {}]   ;;  %s5326_s5 = inlined_call_operand.vmem [shape: f32[1,128], index: 5, kind: input, shape index: {}]   ;;  %s5327_s6 = inlined_call_operand.vmem [shape: f32[1,128], index: 6, kind: input, shape index: {}]   ;;  %s5328_s7 = inlined_call_operand.vmem [shape: f32[9,128], index: 7, kind: input, shape index: {}]   ;;  %s5329_s8 = inlined_call_operand.vmem [shape: f32[1,128], index: 8, kind: input, shape index: {}]   ;;  %s5330_s9 = inlined_call_operand.vmem [shape: f32[1,128], index: 9, kind: input, shape index: {}]   ;;  %s5331_s10 = inlined_call_operand.vmem [shape: bf16[128,32], index: 10, kind: input, shape index: {}]   ;;  %s5332_s11 = inlined_call_operand.vmem [shape: f32[1,32], index: 11, kind: input, shape index: {}]   ;;  %s5333_s12 = inlined_call_operand.vmem [shape: bf16[32,128], index: 12, kind: input, shape index: {}]   ;;  %s5334_s13 = inlined_call_operand.vmem [shape: f32[1,128], index: 13, kind: input, shape index: {}]   ;;  %s5335_s14 = inlined_call_operand.vmem [shape: bf16[128,32], index: 14, kind: input, shape index: {}]   ;;  %s5336_s15 = inlined_call_operand.vmem [shape: f32[1,32], index: 15, kind: input, shape index: {}]   ;;  %s5337_s16 = inlined_call_operand.vmem [shape: f32[1,32], index: 16, kind: input, shape index: {}]   ;;  %s5338_s17 = inlined_call_operand.vmem [shape: bf16[32,256], index: 17, kind: input, shape index: {}]   ;;  %s5339_s18 = inlined_call_operand.vmem [shape: f32[1,256], index: 18, kind: input, shape index: {}]   ;;  %s5340_s19 = inlined_call_operand.vmem [shape: f32[1,256], index: 19, kind: input, shape index: {}]   ;;  %s5341_s20 = inlined_call_operand.vmem [shape: bf16[256,384], index: 20, kind: input, shape index: {}]   ;;  %s5342_s21 = inlined_call_operand.vmem [shape: f32[1,384], index: 21, kind: input, shape index: {}]   ;;  %s5343_s22 = inlined_call_operand.vmem [shape: f32[2,1,384], index: 22, kind: output, shape index: {}]  }
   0x1   :  { %5353 = sst [smem:[#allocation5_spill]] %s5321_s0 }
   0x2   :  { %5354 = sst [smem:[#allocation6_spill]] %s5322_s1 }
   0x3   :  { %5355 = sst [smem:[#allocation7_spill]] %s5323_s2 }
   0x4   :  { %5356 = sst [smem:[#allocation8_spill]] %s5324_s3  ;;  %s4315_s3 = smov 0  }
   0x5   :  { %5357 = sst [smem:[#allocation9_spill]] %s5325_s4 }
   0x6   :  { %5358 = sst [smem:[#allocation10_spill]] %s5326_s5 }
   0x7   :  { %5359 = sst [smem:[#allocation11_spill]] %s5327_s6 }
   0x8 LB: > { %s3487_s28 = sadd.s32 4294967295, %s4193_s3   ;;  %p3491_p0 = scmp.ge.s32.totalorder %s4193_s3, 1  ;;  %s4193_s3 = sphi %s4315_s3, %s32_s3  }
   0x9   : > { %p612_p1 = scmp.lt.s32.totalorder %s4193_s3, 3 }
   0xb   : > { %p613_p2 = pnand %p3491_p0, %p612_p1 }
   0xd   : > { %616 = sbr.rel (%p613_p2) target bundleno = 1831 (0x727), region = 108 }
  0x12   : > { %s5360_s4 = sld [smem:[#allocation6_spill]]  ;;  %vm764_vm0 = vcmask 1040384   ;;  %vm765_vm1 = vcmask 1041408   ;;  %p673_p3 = scmp.lt.s32.totalorder %s3487_s28, 1  ;;  %v4195_v1 = vmov 65535   ;;  %vm751_vm2 = vcmask 23552  }
  0x13   : > { %v766_v2 = vsel %vm764_vm0, 4294967295, %v4195_v1  ;;  %s5361_s30 = sld [smem:[#allocation5_spill]]  ;;  %vm932_vm3 = vcmask 1046528   ;;  %vm1769_vm4 = vcmask 261120   ;;  %vm4197_vm5 = vmmov 0  }
  0x14   : > { %v4332_v5 = vsel %vm765_vm1, %v766_v2, 0  ;;  %s5377_s28 = smov (!%p673_p3, %s3487_s28), 1  ;;  %s5364_s24 = sld [smem:[#allocation7_spill]] }
  0x15   : > { %s3914_s25 = smul.u32 576, %s5377_s28  ;;  %s5365_s26 = sld [smem:[#allocation8_spill]] }
  0x18   : > { %v735_v0 = vld [vmem:[%s5360_s4 + $0x2] sm:$0x3]  ;;  %v734_v3 = vld [vmem:[%s5360_s4] sm:$0x3]  ;;  %v736_v4 = vld [vmem:[%s5360_s4 + $0x4] sm:$0x3] }
  0x19   : > { %v769_v6 = vand.u32 %v4332_v5, %v735_v0  ;;  %v849_v7 = vand.u32 %v4332_v5, %v734_v3  ;;  %v982_v8 = vand.u32 %v4332_v5, %v736_v4  ;;  %v738_v9 = vld [vmem:[%s5360_s4 + $0x8] sm:$0x3]  ;;  %v737_v10 = vld [vmem:[%s5360_s4 + $0x6] sm:$0x3]  ;;  %s4352_s0 = scalar_lea.vmem %s5361_s30, %s3914_s25  ;;  %v740_v38 = vld [vmem:[%s5360_s4 + $0xc] sm:$0x3] }
  0x1a   : > { %v4347_v11 = vand.u32 %v4332_v5, %v738_v9  ;;  %v701_v12 = vld [vmem:[%s4352_s0 + $0x90] sm:$0xff]  ;;  %v4356_v13 = vld [vmem:[%s4352_s0 + $0xa0] sm:$0xff]  ;;  %v4378_v22 = vand.u32 %v4332_v5, %v737_v10  ;;  %v684_v25 = vld [vmem:[%s4352_s0 + $0x8] sm:$0x1]  ;;  %v1398_v0 = vand.u32 %v4332_v5, %v740_v38  ;;  %s5362_s30 = sld [smem:[#allocation9_spill]] }
  0x1b   : > { %3760 = vmatprep.subr.bf16.mxu1 %v769_v6  ;;  %3780 = vmatprep.subr.bf16.mxu0 %v982_v8  ;;  %v4359_v14 = vld [vmem:[%s4352_s0 + $0xb0] sm:$0xff]  ;;  %v4363_v15 = vld [vmem:[%s4352_s0 + $0xc0] sm:$0xff]  ;;  %v747_v17 = vpack.c.bf16 %v4356_v13, %v701_v12  ;;  %v686_v27 = vld [vmem:[%s4352_s0 + $0x18] sm:$0x1]  ;;  %v934_v32 = vrot.slane %v684_v25, 1 }
  0x1c   : > { %3761 = vmatpush3.bf16.msra.mxu1 %v769_v6  ;;  %3781 = vmatpush3.bf16.msra.mxu0 %v982_v8  ;;  %v4366_v16 = vld [vmem:[%s4352_s0 + $0xd0] sm:$0xff]  ;;  %v4370_v18 = vld [vmem:[%s4352_s0 + $0xe0] sm:$0xff]  ;;  %v748_v19 = vpack.c.bf16 %v4363_v15, %v4359_v14  ;;  %v688_v30 = vld [vmem:[%s4352_s0 + $0x28] sm:$0x1]  ;;  %v937_v37 = vrot.slane %v686_v27, 1 }
  0x1d   : > { %3770 = vmatprep.subr.bf16.mxu1 %v849_v7  ;;  %3800 = vmatprep.subr.bf16.mxu0 %v4347_v11  ;;  %v749_v20 = vpack.c.bf16 %v4370_v18, %v4366_v16  ;;  %v683_v21 = vld [vmem:[%s4352_s0] sm:$0xff]  ;;  %v4382_v23 = vld [vmem:[%s4352_s0 + $0xf0] sm:$0xff]  ;;  %v690_v34 = vld [vmem:[%s4352_s0 + $0x38] sm:$0x1]  ;;  %v940_v41 = vrot.slane %v688_v30, 1 }
  0x1e   : > { %3762 = vmatprep.mubr.msk.bf16.mxu1 %vm751_vm2, %v747_v17  ;;  %v4385_v24 = vld [vmem:[%s4352_s0 + $0x100] sm:$0xff]  ;;  %v4389_v26 = vld [vmem:[%s4352_s0 + $0x10] sm:$0xff]  ;;  %v933_v28 = vrot.slane %v683_v21, 1  ;;  %v692_v36 = vld [vmem:[%s4352_s0 + $0x48] sm:$0x1]  ;;  %v943_v46 = vrot.slane %v690_v34, 1 }
  0x1f   : > { %3763 = vmatmul.mubr.msk.bf16.vlgmr.msra.gmra.mxu1 %vm751_vm2, %v748_v19  ;;  %v4394_v29 = vld [vmem:[%s4352_s0 + $0x20] sm:$0xff]  ;;  %v4398_v31 = vld [vmem:[%s4352_s0 + $0x30] sm:$0xff]  ;;  %v936_v33 = vrot.slane %v4389_v26, 1  ;;  %v694_v44 = vld [vmem:[%s4352_s0 + $0x58] sm:$0x1]  ;;  %v946_v48 = vrot.slane %v692_v36, 1  ;;  %v750_v51 = vpack.c.bf16 %v4385_v24, %v4382_v23  ;;  %v743_v59 = vpack.c.bf16 %v4389_v26, %v683_v21 }
  0x20   : > { %3771 = vmatpush3.bf16.msra.mxu1 %v849_v7  ;;  %3766 = vmatprep.mubr.msk.bf16.mxu1 %vm751_vm2, %v749_v20  ;;  %v4404_v35 = vld [vmem:[%s4352_s0 + $0x40] sm:$0xff]  ;;  %v935_v39 = vsel %vm932_vm3, %v933_v28, %v934_v32  ;;  %v939_v40 = vrot.slane %v4394_v29, 1  ;;  %v942_v42 = vrot.slane %v4398_v31, 1  ;;  %v4415_v43 = vld [vmem:[%s4352_s0 + $0x50] sm:$0xff]  ;;  %v696_v50 = vld [vmem:[%s4352_s0 + $0x68] sm:$0x1] }
  0x21   : > { %3790 = vmatprep.subr.bf16.mxu1 %v4378_v22  ;;  %v4419_v45 = vsel %vm932_vm3, %v936_v33, %v937_v37  ;;  %v945_v47 = vrot.slane %v4404_v35, 1  ;;  %v4423_v49 = vld [vmem:[%s4352_s0 + $0x60] sm:$0xff]  ;;  %v948_v54 = vrot.slane %v4415_v43, 1  ;;  %v4434_v55 = vld [vmem:[%s4352_s0 + $0x70] sm:$0xff]  ;;  %v698_v56 = vld [vmem:[%s4352_s0 + $0x78] sm:$0x1]  ;;  %v745_v17 = vpack.c.bf16 %v4415_v43, %v4404_v35 }
  0x22   : > { %v4429_v52 = vsel %vm932_vm3, %v939_v40, %v940_v41  ;;  %v965_v53 = vpack.c.bf16 %v4419_v45, %v935_v39  ;;  %v4438_v57 = vsel %vm932_vm3, %v942_v42, %v943_v46  ;;  %v949_v60 = vrot.slane %v694_v44, 1  ;;  %v726_v8 = vld [vmem:[%s4352_s0 + $0x1b0] sm:$0xff]  ;;  %v727_v9 = vld [vmem:[%s4352_s0 + $0x1c0] sm:$0xff]  ;;  %v739_v10 = vld [vmem:[%s5360_s4 + $0xa] sm:$0x3] }
  0x23   : > { %v4441_v58 = vsel %vm932_vm3, %v945_v47, %v946_v48  ;;  %v966_v61 = vpack.c.bf16 %v4438_v57, %v4429_v52  ;;  %v951_v62 = vrot.slane %v4423_v49, 1  ;;  %v952_v63 = vrot.slane %v696_v50, 1  ;;  %v728_v21 = vld [vmem:[%s4352_s0 + $0x1d0] sm:$0xff]  ;;  %v729_v25 = vld [vmem:[%s4352_s0 + $0x1e0] sm:$0xff]  ;;  %v741_v50 = vld [vmem:[%s5360_s4 + $0xe] sm:$0x3] }
  0x24   : > { %3782 = vmatprep.mubr.msk.bf16.mxu0 %vm751_vm2, %v965_v53  ;;  %v4450_v1 = vsel %vm932_vm3, %v948_v54, %v949_v60  ;;  %v954_v2 = vrot.slane %v4434_v55, 1  ;;  %v955_v3 = vrot.slane %v698_v56, 1  ;;  %v1149_v19 = vpack.c.bf16 %v727_v9, %v726_v8  ;;  %v4481_v27 = vld [vmem:[%s4352_s0 + $0x110] sm:$0xff]  ;;  %v710_v28 = vld [vmem:[%s4352_s0 + $0x120] sm:$0xff]  ;;  %v713_v53 = vld [vmem:[%s4352_s0 + $0x138] sm:$0x1] }
  0x25   : > { %3783 = vmatmul.mubr.msk.bf16.vlgmr.msra.gmra.mxu0 %vm751_vm2, %v966_v61  ;;  %v967_v4 = vpack.c.bf16 %v4450_v1, %v4441_v58  ;;  %v4460_v6 = vsel %vm932_vm3, %v951_v62, %v952_v63  ;;  %v1306_v20 = vand.u32 %v4332_v5, %v739_v10  ;;  %v712_v30 = vld [vmem:[%s4352_s0 + $0x130] sm:$0xff]  ;;  %v731_v33 = vld [vmem:[%s4352_s0 + $0x200] sm:$0xff]  ;;  %v1476_v36 = vpack.c.bf16 %v4481_v27, %v4385_v24  ;;  %v717_v9 = vld [vmem:[%s4352_s0 + $0x158] sm:$0x1] }
  0x26   : > { %3801 = vmatpush3.bf16.msra.mxu0 %v4347_v11  ;;  %v4463_v7 = vsel %vm932_vm3, %v954_v2, %v955_v3  ;;  %v744_v11 = vpack.c.bf16 %v4398_v31, %v4394_v29  ;;  %v730_v32 = vld [vmem:[%s4352_s0 + $0x1f0] sm:$0xff]  ;;  %v1150_v37 = vpack.c.bf16 %v729_v25, %v728_v21  ;;  %v1057_v38 = vpack.c.bf16 %v712_v30, %v710_v28  ;;  %v714_v41 = vld [vmem:[%s4352_s0 + $0x140] sm:$0xff]  ;;  %v715_v3 = vld [vmem:[%s4352_s0 + $0x148] sm:$0x1] }
  0x27   : > { %3767 = vmatmul.mubr.msk.bf16.gmra.mxu1 %vm751_vm2, %v750_v51  ;;  %3786 = vmatprep.mubr.msk.bf16.mxu0 %vm751_vm2, %v967_v4  ;;  %v968_v12 = vpack.c.bf16 %v4463_v7, %v4460_v6  ;;  %v742_v34 = vld [vmem:[%s5360_s4 + $0x10] sm:$0x3]  ;;  %v1151_v39 = vpack.c.bf16 %v731_v33, %v730_v32  ;;  %v733_v46 = vld [vmem:[%s4352_s0 + $0x220] sm:$0xff]  ;;  %v711_v51 = vld [vmem:[%s4352_s0 + $0x128] sm:$0x1]  ;;  %v1490_v61 = vand.u32 %v4332_v5, %v741_v50  ;;  %v1260_v62 = vrot.slane %v712_v30, 1 }
  0x28   : > { %3772 = vmatprep.mubr.msk.bf16.mxu1 %vm751_vm2, %v743_v59  ;;  %3820 = vmatprep.subr.bf16.mxu0 %v1398_v0  ;;  %v1588_v40 = vand.u32 %v4332_v5, %v742_v34  ;;  %v716_v42 = vld [vmem:[%s4352_s0 + $0x150] sm:$0xff]  ;;  %v718_v47 = vld [vmem:[%s4352_s0 + $0x160] sm:$0xff]  ;;  %v1257_v59 = vrot.slane %v710_v28, 1  ;;  %v1381_v63 = vpack.c.bf16 %v4394_v29, %v4389_v26  ;;  %v1261_v2 = vrot.slane %v713_v53, 1  ;;  %v721_v26 = vld [vmem:[%s4352_s0 + $0x178] sm:$0x1] }
  0x29   : > { %v732_v44 = vld [vmem:[%s4352_s0 + $0x210] sm:$0xff]  ;;  %v1058_v54 = vpack.c.bf16 %v716_v42, %v714_v41  ;;  %v722_v4 = vld [vmem:[%s4352_s0 + $0x180] sm:$0xff]  ;;  %v1263_v10 = vrot.slane %v714_v41, 1  ;;  %v1269_v5 = vrot.slane %v718_v47, 1  ;;  %v1264_v21 = vrot.slane %v715_v3, 1 }
  0x2a   : > { %v720_v48 = vld [vmem:[%s4352_s0 + $0x170] sm:$0xff]  ;;  %v1152_v56 = vpack.c.bf16 %v733_v46, %v732_v44  ;;  %v1382_v25 = vpack.c.bf16 %v4404_v35, %v4398_v31  ;;  %v1267_v28 = vrot.slane %v717_v9, 1  ;;  %v1383_v33 = vpack.c.bf16 %v4423_v49, %v4415_v43 }
  0x2b   : > { %v1059_v60 = vpack.c.bf16 %v720_v48, %v718_v47  ;;  %v724_v8 = vld [vmem:[%s4352_s0 + $0x190] sm:$0xff]  ;;  %v1272_v29 = vrot.slane %v720_v48, 1  ;;  %v1273_v34 = vrot.slane %v721_v26, 1  ;;  %v1275_v35 = vrot.slane %v722_v4, 1 }
  0x2c   : > { %v1278_v41 = vrot.slane %v724_v8, 1  ;;  %v1571_v50 = vpack.c.bf16 %v4429_v52, %v4419_v45  ;;  %v1572_v53 = vpack.c.bf16 %v4441_v58, %v4438_v57  ;;  %v1473_v45 = vpack.c.bf16 %v4359_v14, %v4356_v13 }
  0x2d   : > { %3787 = vmatmul.mubr.msk.bf16.gmra.mxu0 %vm751_vm2, %v968_v12  ;;  %v719_v12 = vld [vmem:[%s4352_s0 + $0x168] sm:$0x1]  ;;  %v1474_v57 = vpack.c.bf16 %v4366_v16, %v4363_v15  ;;  %v1475_v14 = vpack.c.bf16 %v4382_v23, %v4370_v18  ;;  %v3930_v16 = vld [vmem:[%s5362_s30] sm:$0xff]  }
  0x2e   : > { %3802 = vmatprep.mubr.msk.bf16.mxu0 %vm751_vm2, %v1149_v19  ;;  %v1262_v19 = vsel %vm932_vm3, %v1260_v62, %v1261_v2  ;;  %v1270_v32 = vrot.slane %v719_v12, 1  ;;  %v3929_v15 = vld [vmem:[%s5362_s30 + $0x8] sm:$0xff]  }
  0x2f   : > { %3773 = vmatmul.mubr.msk.bf16.vlgmr.msra.gmra.mxu1 %vm751_vm2, %v744_v11  ;;  %v1266_v11 = vrot.slane %v716_v42, 1 }
  0x30   : > { %3791 = vmatpush3.bf16.msra.mxu1 %v4378_v22  ;;  %3776 = vmatprep.mubr.msk.bf16.mxu1 %vm751_vm2, %v745_v17  ;;  %v746_v22 = vpack.c.bf16 %v4434_v55, %v4423_v49  ;;  %v1271_v43 = vsel %vm932_vm3, %v1269_v5, %v1270_v32  ;;  %v1274_v49 = vsel %vm932_vm3, %v1272_v29, %v1273_v34 }
  0x31   : > { %3810 = vmatprep.subr.bf16.mxu1 %v1306_v20  ;;  %v1268_v31 = vsel %vm932_vm3, %v1266_v11, %v1267_v28  ;;  %v1291_v47 = vpack.c.bf16 %v1274_v49, %v1271_v43 }
  0x35   : > { %3803 = vmatmul.mubr.msk.bf16.vlgmr.msra.gmra.mxu0 %vm751_vm2, %v1150_v37  ;;  %v723_v37 = vld [vmem:[%s4352_s0 + $0x188] sm:$0x1] }
  0x36   : > { %3821 = vmatpush3.bf16.msra.mxu0 %v1398_v0  ;;  %3806 = vmatprep.mubr.msk.bf16.mxu0 %vm751_vm2, %v1151_v39  ;;  %v1258_v0 = vrot.slane %v711_v51, 1  ;;  %v1265_v39 = vsel %vm932_vm3, %v1263_v10, %v1264_v21  ;;  %v1276_v46 = vrot.slane %v723_v37, 1 }
  0x37   : > { %3777 = vmatmul.mubr.msk.bf16.gmra.mxu1 %vm751_vm2, %v746_v22  ;;  %3840 = vmatprep.subr.bf16.mxu0 %v1588_v40  ;;  %v699_v22 = vld [vmem:[%s4352_s0 + $0x80] sm:$0xff]  ;;  %v1290_v42 = vpack.c.bf16 %v1268_v31, %v1265_v39 }
  0x38   : > { %3792 = vmatprep.mubr.msk.bf16.mxu1 %vm751_vm2, %v1057_v38  ;;  %v1259_v17 = vsel %vm932_vm3, %v1257_v59, %v1258_v0  ;;  %v725_v38 = vld [vmem:[%s4352_s0 + $0x198] sm:$0x1]  ;;  %v1384_v44 = vpack.c.bf16 %v699_v22, %v4434_v55  ;;  %v700_v55 = vld [vmem:[%s4352_s0 + $0x88] sm:$0x1]  ;;  %v1567_v52 = vrot.slane %v699_v22, 1  ;;  %s3915_s0 = smul.u32 3, %s5377_s28 }
  0x39   : > { %v1289_v30 = vpack.c.bf16 %v1262_v19, %v1259_v17  ;;  %v1279_v48 = vrot.slane %v725_v38, 1  ;;  %v1568_v59 = vrot.slane %v700_v55, 1 }
  0x3a   : > { %s681_s5 = scalar_lea.vmem %s5343_s22, %s3915_s0 }
  0x3b   : > { %v1280_v51 = vsel %vm932_vm3, %v1278_v41, %v1279_v48 }
  0x3d   : > { %3807 = vmatmul.mubr.msk.bf16.gmra.mxu0 %vm751_vm2, %v1152_v56  ;;  %v1573_v56 = vpack.c.bf16 %v4460_v6, %v4450_v1 }
  0x3e   : > { %3822 = vmatprep.mubr.msk.bf16.mxu0 %vm751_vm2, %v1381_v63 }
  0x3f   : > { %3793 = vmatmul.mubr.msk.bf16.vlgmr.msra.gmra.mxu1 %vm751_vm2, %v1058_v54 }
  0x40   : > { %3811 = vmatpush3.bf16.msra.mxu1 %v1306_v20  ;;  %3796 = vmatprep.mubr.msk.bf16.mxu1 %vm751_vm2, %v1059_v60  ;;  %v1060_v20 = vpack.c.bf16 %v724_v8, %v722_v4  ;;  %v1569_v60 = vsel %vm932_vm3, %v1567_v52, %v1568_v59 }
  0x41   : > { %3830 = vmatprep.subr.bf16.mxu1 %v1490_v61  ;;  %v1574_v13 = vpack.c.bf16 %v1569_v60, %v4463_v7 }
  0x45   : > { %3823 = vmatmul.mubr.msk.bf16.vlgmr.msra.gmra.mxu0 %vm751_vm2, %v1382_v25 }
  0x46   : > { %3841 = vmatpush3.bf16.msra.mxu0 %v1588_v40  ;;  %3826 = vmatprep.mubr.msk.bf16.mxu0 %vm751_vm2, %v1383_v33  ;;  %v1277_v40 = vsel %vm932_vm3, %v1275_v35, %v1276_v46 }
  0x47   : > { %3797 = vmatmul.mubr.msk.bf16.gmra.mxu1 %vm751_vm2, %v1060_v20  ;;  %v1292_v54 = vpack.c.bf16 %v1280_v51, %v1277_v40 }
  0x48   : > { %3812 = vmatprep.mubr.msk.bf16.mxu1 %vm751_vm2, %v1289_v30 }
  0x4d   : > { %3827 = vmatmul.mubr.msk.bf16.gmra.mxu0 %vm751_vm2, %v1384_v44 }
  0x4e   : > { %3842 = vmatprep.mubr.msk.bf16.mxu0 %vm751_vm2, %v1571_v50 }
  0x4f   : > { %3813 = vmatmul.mubr.msk.bf16.vlgmr.msra.gmra.mxu1 %vm751_vm2, %v1290_v42 }
  0x50   : > { %3831 = vmatpush3.bf16.msra.mxu1 %v1490_v61  ;;  %3816 = vmatprep.mubr.msk.bf16.mxu1 %vm751_vm2, %v1291_v47 }
  0x51   : > { %3850 = vmatprep.subr.bf16.mxu1 %v3929_v15 }
  0x55   : > { %3843 = vmatmul.mubr.msk.bf16.vlgmr.msra.gmra.mxu0 %vm751_vm2, %v1572_v53 }
  0x56   : > { %3846 = vmatprep.mubr.msk.bf16.mxu0 %vm751_vm2, %v1573_v56 }
  0x57   : > { %3817 = vmatmul.mubr.msk.bf16.gmra.mxu1 %vm751_vm2, %v1292_v54 }
  0x58   : > { %3832 = vmatprep.mubr.msk.bf16.mxu1 %vm751_vm2, %v1473_v45 }
  0x5d   : > { %3847 = vmatmul.mubr.msk.bf16.gmra.mxu0 %vm751_vm2, %v1574_v13 }
  0x5f   : > { %3833 = vmatmul.mubr.msk.bf16.vlgmr.msra.gmra.mxu1 %vm751_vm2, %v1474_v57 }
  0x60   : > { %3836 = vmatprep.mubr.msk.bf16.mxu1 %vm751_vm2, %v1475_v14  ;;  %3851 = vmatpush3.bf16.msra.mxu1 %v3929_v15 }
  0x61   : > { %3852 = vmatprep.subr.bf16.mxu1 %v3930_v16 }
  0x64   : > { %3853 = vmatpush3.bf16.msra.mxu1 %v3930_v16 }
  0x67   : > { %3837 = vmatmul.mubr.msk.bf16.gmra.mxu1 %vm751_vm2, %v1476_v36 }
  0xdf   : > { %v3764_v18 = vpop.f32.mrf.mxu1 }
  0xe1   : > { %v805_v23 = vpop.f32.mrf.mxu1 }
  0xe3   : > { %v3765_v58 = vpop.f32.mrf.mxu1 }
  0xe5   : > { %v808_v1 = vpop.f32.mrf.mxu1  ;;  %v3784_v24 = vpop.f32.mrf.mxu0 }
  0xe7   : > { %v3768_v6 = vpop.f32.mrf.mxu1  ;;  %v1018_v27 = vpop.f32.mrf.mxu0 }
  0xe9   : > { %v821_v7 = vpop.f32.mrf.mxu1  ;;  %v3785_v61 = vpop.f32.mrf.mxu0 }
  0xeb   : > { %v3769_v36 = vpop.f32.mrf.mxu1  ;;  %v1021_v63 = vpop.f32.mrf.mxu0 }
  0xed   : > { %v4584_v62 = vpop.f32.mrf.mxu1  ;;  %v3788_v2 = vpop.f32.mrf.mxu0 }
  0xef   : > { %v3774_v0 = vpop.f32.mrf.mxu1  ;;  %v4586_v4 = vpop.f32.mrf.mxu0 }
  0xf0   : > { %v894_v44 = vadd.f32 %v3774_v0, %v3764_v18 }
  0xf1   : > { %v885_v3 = vpop.f32.mrf.mxu1  ;;  %v4588_v9 = vpop.f32.mrf.mxu0 }
  0xf2   : > { %v886_v48 = vadd.f32 %v885_v3, %v805_v23  ;;  %v1051_v55 = vadd.f32 %v3784_v24, %v894_v44 }
  0xf3   : > { %v3775_v8 = vpop.f32.mrf.mxu1  ;;  %v4590_v11 = vpop.f32.mrf.mxu0 }
  0xf4   : > { %v897_v51 = vadd.f32 %v3775_v8, %v3765_v58  ;;  %v1049_v56 = vadd.f32 %v1018_v27, %v886_v48 }
  0xf5   : > { %v888_v10 = vpop.f32.mrf.mxu1  ;;  %v3804_v5 = vpop.f32.mrf.mxu0 }
  0xf6   : > { %v889_v45 = vadd.f32 %v888_v10, %v808_v1  ;;  %v1052_v13 = vadd.f32 %v3785_v61, %v897_v51 }
  0xf7   : > { %v3778_v12 = vpop.f32.mrf.mxu1  ;;  %v1202_v29 = vpop.f32.mrf.mxu0 }
  0xf8   : > { %v910_v14 = vadd.f32 %v3778_v12, %v3768_v6  ;;  %v1050_v23 = vadd.f32 %v1021_v63, %v889_v45 }
  0xf9   : > { %v901_v26 = vpop.f32.mrf.mxu1  ;;  %v3805_v19 = vpop.f32.mrf.mxu0 }
  0xfa   : > { %v902_v3 = vadd.f32 %v901_v26, %v821_v7  ;;  %v1055_v10 = vadd.f32 %v3788_v2, %v910_v14 }
  0xfb   : > { %v3779_v17 = vpop.f32.mrf.mxu1  ;;  %v1205_v25 = vpop.f32.mrf.mxu0 }
  0xfc   : > { %v913_v58 = vadd.f32 %v3779_v17, %v3769_v36  ;;  %v1053_v12 = vadd.f32 %v4586_v4, %v902_v3  ;;  %v4618_v4 = vld [vmem:[%s5364_s24] ss:$0 sm:$0xff]  ;;  %s5367_s24 = sld [smem:[#allocation10_spill]] }
  0xfd   : > { %v904_v21 = vpop.f32.mrf.mxu1  ;;  %v4592_v28 = vpop.f32.mrf.mxu0 }
  0xfe   : > { %v905_v27 = vadd.f32 %v904_v21, %v4584_v62  ;;  %v1056_v63 = vadd.f32 %v4588_v9, %v913_v58 }
  0xff   : > { %v3794_v20 = vpop.f32.mrf.mxu1  ;;  %v4594_v32 = vpop.f32.mrf.mxu0 }
 0x100   : > { %v1143_v52 = vadd.f32 %v3794_v20, %v1051_v55 }
 0x101   : > { %v1110_v30 = vpop.f32.mrf.mxu1  ;;  %v4596_v34 = vpop.f32.mrf.mxu0 }
 0x102   : > { %v1141_v57 = vadd.f32 %v1110_v30, %v1049_v56  ;;  %v1235_v0 = vadd.f32 %v3804_v5, %v1143_v52 }
 0x103   : > { %v3795_v33 = vpop.f32.mrf.mxu1  ;;  %v4598_v37 = vpop.f32.mrf.mxu0 }
 0x104   : > { %v1144_v18 = vadd.f32 %v3795_v33, %v1052_v13  ;;  %v1233_v1 = vadd.f32 %v1202_v29, %v1141_v57  ;;  %v1054_v29 = vadd.f32 %v4590_v11, %v905_v27 }
 0x105   : > { %v1113_v22 = vpop.f32.mrf.mxu1  ;;  %v3824_v39 = vpop.f32.mrf.mxu0 }
 0x106   : > { %v1142_v44 = vadd.f32 %v1113_v22, %v1050_v23  ;;  %v1236_v61 = vadd.f32 %v3805_v19, %v1144_v18 }
 0x107   : > { %v3798_v38 = vpop.f32.mrf.mxu1  ;;  %v1434_v35 = vpop.f32.mrf.mxu0 }
 0x108   : > { %v1147_v6 = vadd.f32 %v3798_v38, %v1055_v10  ;;  %v1234_v36 = vadd.f32 %v1205_v25, %v1142_v44 }
 0x109   : > { %v1126_v31 = vpop.f32.mrf.mxu1  ;;  %v3825_v49 = vpop.f32.mrf.mxu0 }
 0x10a   : > { %v1145_v17 = vadd.f32 %v1126_v31, %v1053_v12  ;;  %v1239_v19 = vadd.f32 %v4592_v28, %v1147_v6 }
 0x10b   : > { %v3799_v43 = vpop.f32.mrf.mxu1  ;;  %v4600_v42 = vpop.f32.mrf.mxu0 }
 0x10c   : > { %v1148_v33 = vadd.f32 %v3799_v43, %v1056_v63  ;;  %v1237_v11 = vadd.f32 %v4594_v32, %v1145_v17 }
 0x10d   : > { %v1129_v41 = vpop.f32.mrf.mxu1  ;;  %v4602_v47 = vpop.f32.mrf.mxu0 }
 0x10e   : > { %v1240_v43 = vadd.f32 %v4596_v34, %v1148_v33 }
 0x10f   : > { %v3814_v46 = vpop.f32.mrf.mxu1  ;;  %v4604_v40 = vpop.f32.mrf.mxu0 }
 0x111   : > { %v1342_v50 = vpop.f32.mrf.mxu1  ;;  %v4606_v54 = vpop.f32.mrf.mxu0 }
 0x112   : > { %5363 = vst [vmem:[#allocation3_spill] sm:$0xff] %v4606_v54  ;;  %v1375_v54 = vadd.f32 %v3814_v46, %v1235_v0  ;;  %v1373_v30 = vadd.f32 %v1342_v50, %v1233_v1  ;;  %v1146_v50 = vadd.f32 %v1129_v41, %v1054_v29 }
 0x113   : > { %v3815_v53 = vpop.f32.mrf.mxu1  ;;  %v4608_v60 = vpop.f32.mrf.mxu0 }
 0x114   : > { %v1376_v7 = vadd.f32 %v3815_v53, %v1236_v61  ;;  %v1467_v26 = vadd.f32 %v3824_v39, %v1375_v54  ;;  %v1465_v46 = vadd.f32 %v1434_v35, %v1373_v30  ;;  %v3530_v35 = vld [vmem:[%s5365_s26] ss:$0 sm:$0xff]  ;;  %s5368_s26 = sld [smem:[#allocation11_spill]] }
 0x115   : > { %v1345_v59 = vpop.f32.mrf.mxu1  ;;  %v3844_v16 = vpop.f32.mrf.mxu0 }
 0x116   : > { %v1374_v2 = vadd.f32 %v1345_v59, %v1234_v36  ;;  %v1468_v39 = vadd.f32 %v3825_v49, %v1376_v7  ;;  %v1238_v49 = vadd.f32 %v4598_v37, %v1146_v50 }
 0x117   : > { %v3818_v15 = vpop.f32.mrf.mxu1  ;;  %v1624_v8 = vpop.f32.mrf.mxu0 }
 0x118   : > { %v1379_v31 = vadd.f32 %v3818_v15, %v1239_v19  ;;  %v1466_v54 = vadd.f32 %v4600_v42, %v1374_v2 }
 0x119   : > { %v1358_v24 = vpop.f32.mrf.mxu1  ;;  %v3845_v48 = vpop.f32.mrf.mxu0  ;;  %v5366_v1 = vld [vmem:[#allocation3_spill] sm:$0xff] }
 0x11a   : > { %v1377_v45 = vadd.f32 %v1358_v24, %v1237_v11  ;;  %v1471_v15 = vadd.f32 %v4602_v47, %v1379_v31 }
 0x11b   : > { %v3819_v20 = vpop.f32.mrf.mxu1  ;;  %v1627_v62 = vpop.f32.mrf.mxu0 }
 0x11c   : > { %v1380_v52 = vadd.f32 %v3819_v20, %v1240_v43  ;;  %v1469_v3 = vadd.f32 %v4604_v40, %v1377_v45 }
 0x11d   : > { %v1361_v5 = vpop.f32.mrf.mxu1  ;;  %v3848_v28 = vpop.f32.mrf.mxu0 }
 0x11e   : > { %v1378_v13 = vadd.f32 %v1361_v5, %v1238_v49  ;;  %v1472_v47 = vadd.f32 %v5366_v1, %v1380_v52 }
 0x11f   : > { %v3834_v22 = vpop.f32.mrf.mxu1  ;;  %v1640_v14 = vpop.f32.mrf.mxu0 }
 0x120   : > { %v1559_v21 = vadd.f32 %v3834_v22, %v1467_v26  ;;  %v1470_v30 = vadd.f32 %v4608_v60, %v1378_v13 }
 0x121   : > { %v1526_v9 = vpop.f32.mrf.mxu1  ;;  %v3849_v10 = vpop.f32.mrf.mxu0 }
 0x122   : > { %v1657_v25 = vadd.f32 %v3844_v16, %v1559_v21  ;;  %v1557_v38 = vadd.f32 %v1526_v9, %v1465_v46 }
 0x123   : > { %v3835_v41 = vpop.f32.mrf.mxu1  ;;  %v1643_v29 = vpop.f32.mrf.mxu0 }
 0x124   : > { %v1672_v51 = vmul.f32 %v4618_v4, %v1657_v25  ;;  %v1655_v55 = vadd.f32 %v1624_v8, %v1557_v38  ;;  %v1560_v53 = vadd.f32 %v3835_v41, %v1468_v39 }
 0x125   : > { %v1529_v56 = vpop.f32.mrf.mxu1 }
 0x126   : > { %v4628_v32 = vadd.f32 %v3530_v35, %v1672_v51  ;;  %v1670_v34 = vmul.f32 %v4618_v4, %v1655_v55  ;;  %v1658_v59 = vadd.f32 %v3845_v48, %v1560_v53  ;;  %v1558_v57 = vadd.f32 %v1529_v56, %v1466_v54 }
 0x127   : > { %v3838_v16 = vpop.f32.mrf.mxu1 }
 0x128   : > { %v3533_v18 = vmul.f32 -1.442695, %v4628_v32  ;;  %v4633_v23 = vadd.f32 %v3530_v35, %v1670_v34  ;;  %v1673_v42 = vmul.f32 %v4618_v4, %v1658_v59  ;;  %v1656_v0 = vadd.f32 %v1627_v62, %v1558_v57 }
 0x129   : > { %v1563_v37 = vadd.f32 %v3838_v16, %v1471_v15  ;;  %v1542_v58 = vpop.f32.mrf.mxu1 }
 0x12a   : > { %v3531_v24 = vmul.f32 -1.442695, %v4633_v23  ;;  %v4638_v8 = vadd.f32 %v3530_v35, %v1673_v42  ;;  %v1671_v44 = vmul.f32 %v4618_v4, %v1656_v0  ;;  %4019 = vpow2.f32 %v3533_v18 }
 0x12b   : > { %v1661_v27 = vadd.f32 %v3848_v28, %v1563_v37  ;;  %v1561_v20 = vadd.f32 %v1542_v58, %v1469_v3  ;;  %v3839_v48 = vpop.f32.mrf.mxu1 }
 0x12c   : > { %4021 = vpow2.f32 %v3531_v24  ;;  %v3534_v61 = vmul.f32 -1.442695, %v4638_v8  ;;  %v1686_v40 = vadd.f32 %v3530_v35, %v1671_v44  ;;  %v1564_v6 = vadd.f32 %v3839_v48, %v1472_v47  ;;  %v3934_v48 = vld [vmem:[%s5331_s10 + $0x20] sm:$0xff]  }
 0x12d   : > { %v1676_v12 = vmul.f32 %v4618_v4, %v1661_v27  ;;  %v1659_v63 = vadd.f32 %v1640_v14, %v1561_v20  ;;  %v1545_v5 = vpop.f32.mrf.mxu1  ;;  %v3931_v27 = vld [vmem:[%s5331_s10 + $0x38] sm:$0xff]   ;;  %v3933_v20 = vld [vmem:[%s5331_s10 + $0x28] sm:$0xff]  }
 0x12e   : > { %4023 = vpow2.f32 %v3534_v61  ;;  %v3532_v7 = vmul.f32 -1.442695, %v1686_v40  ;;  %v1662_v36 = vadd.f32 %v3849_v10, %v1564_v6  ;;  %v1562_v26 = vadd.f32 %v1545_v5, %v1470_v30  ;;  %v3932_v10 = vld [vmem:[%s5331_s10 + $0x30] sm:$0xff]   ;;  %v3935_v30 = vld [vmem:[%s5331_s10 + $0x18] sm:$0xff]   ;;  %v3938_v6 = vld [vmem:[%s5331_s10] sm:$0xff]  }
 0x12f   : > { %v1691_v17 = vadd.f32 %v3530_v35, %v1676_v12  ;;  %v1674_v33 = vmul.f32 %v4618_v4, %v1659_v63  ;;  %v3936_v61 = vld [vmem:[%s5331_s10 + $0x10] sm:$0xff]   ;;  %v3545_v12 = vld [vmem:[%s5367_s24] ss:$0 sm:$0xff] }
 0x130   : > { %4025 = vpow2.f32 %v3532_v7  ;;  %v1677_v60 = vmul.f32 %v4618_v4, %v1662_v36  ;;  %v1660_v22 = vadd.f32 %v1643_v29, %v1562_v26  ;;  %v3546_v5 = vld [vmem:[%s5368_s26] ss:$0 sm:$0xff] }
 0x131   : > { %v3537_v62 = vmul.f32 -1.442695, %v1691_v17  ;;  %v1689_v2 = vadd.f32 %v3530_v35, %v1674_v33 }
 0x132   : > { %v1692_v21 = vadd.f32 %v3530_v35, %v1677_v60  ;;  %v1675_v46 = vmul.f32 %v4618_v4, %v1660_v22 }
 0x133   : > { %4027 = vpow2.f32 %v3537_v62  ;;  %v3535_v50 = vmul.f32 -1.442695, %v1689_v2 }
 0x134   : > { %v3538_v19 = vmul.f32 -1.442695, %v1692_v21  ;;  %v1690_v9 = vadd.f32 %v3530_v35, %v1675_v46 }
 0x135   : > { %4029 = vpow2.f32 %v3535_v50 }
 0x136   : > { %4031 = vpow2.f32 %v3538_v19  ;;  %v3536_v25 = vmul.f32 -1.442695, %v1690_v9 }
 0x137   : > { %v4020_v38 = vpop.eup %4019 }
 0x138   : > { %4033 = vpow2.f32 %v3536_v25  ;;  %v1719_v43 = vadd.f32 1.0, %v4020_v38 }
 0x139   : > { %v4022_v39 = vpop.eup %4021 }
 0x13a   : > { %v1717_v31 = vadd.f32 1.0, %v4022_v39 }
 0x13b   : > { %v4024_v11 = vpop.eup %4023 }
 0x13c   : > { %v1720_v41 = vadd.f32 1.0, %v4024_v11  ;;  %4035 = vrcp.f32 %v1717_v31 }
 0x13d   : > { %v4026_v28 = vpop.eup %4025 }
 0x13e   : > { %4037 = vrcp.f32 %v1720_v41  ;;  %v1718_v51 = vadd.f32 1.0, %v4026_v28 }
 0x13f   : > { %4039 = vrcp.f32 %v1719_v43 }
 0x140   : > { %v4028_v4 = vpop.eup %4027  ;;  %4041 = vrcp.f32 %v1718_v51 }
 0x141   : > { %v1723_v35 = vadd.f32 1.0, %v4028_v4 }
 0x142   : > { %v4030_v55 = vpop.eup %4029 }
 0x143   : > { %v4032_v53 = vpop.eup %4031  ;;  %v1721_v54 = vadd.f32 1.0, %v4030_v55 }
 0x144   : > { %v1724_v45 = vadd.f32 1.0, %v4032_v53 }
 0x145   : > { %v4034_v52 = vpop.eup %4033  ;;  %4043 = vrcp.f32 %v1721_v54 }
 0x146   : > { %4045 = vrcp.f32 %v1724_v45  ;;  %v1722_v49 = vadd.f32 1.0, %v4034_v52 }
 0x147   : > { %4047 = vrcp.f32 %v1723_v35 }
 0x148   : > { %4049 = vrcp.f32 %v1722_v49 }
 0x149   : > { %v4036_v56 = vpop.eup %4035 }
 0x14a   : > { %v1741_v14 = vmul.f32 %v4036_v56, %v4633_v23  ;;  %v5346_v56 = vlaneseq }
 0x14b   : > { %v4038_v34 = vpop.eup %4037 }
 0x14c   : > { %v4040_v59 = vpop.eup %4039  ;;  %v1744_v13 = vmul.f32 %v4038_v34, %v4638_v8 }
 0x14d   : > { %v4042_v57 = vpop.eup %4041  ;;  %v1743_v16 = vmul.f32 %v4040_v59, %v4628_v32  ;;  %v5348_v32 = vmov 0.0  }
 0x14e   : > { %v1742_v15 = vmul.f32 %v4042_v57, %v1686_v40  ;;  %1939 = vst [vmem:[#allocation2 + $0x30] sm:$0xff] %v5348_v32  ;;  %1940 = vst [vmem:[#allocation2 + $0x38] sm:$0x3] %v5348_v32  ;;  %3862 = vmatprep.subr.bf16.mxu0 %v5348_v32  ;;  %3882 = vmatprep.subr.bf16.mxu1 %v5348_v32  ;;  %v3937_v40 = vld [vmem:[%s5331_s10 + $0x8] sm:$0xff]  }
 0x14f   : > { %v1750_v42 = vpack.c.bf16 %v1744_v13, %v1743_v16  ;;  %1933 = vst [vmem:[#allocation2] sm:$0xff] %v5348_v32  ;;  %1934 = vst [vmem:[#allocation2 + $0x8] sm:$0x3] %v5348_v32  ;;  %3878 = vmatprep.mubr.msk.bf16.mxu0 %vm4197_vm5, %v5348_v32  ;;  %3863 = vmatpush3.bf16.msra.mxu0 %v3931_v27 }
 0x150   : > { %v1749_v18 = vpack.c.bf16 %v1742_v15, %v1741_v14  ;;  %1935 = vst [vmem:[#allocation2 + $0x10] sm:$0xff] %v5348_v32  ;;  %1936 = vst [vmem:[#allocation2 + $0x18] sm:$0x3] %v5348_v32  ;;  %3864 = vmatprep.subr.bf16.mxu0 %v5348_v32  ;;  %v4741_v14 = vshrl.u32 %v5346_v56, 7 }
 0x151   : > { %1937 = vst [vmem:[#allocation2 + $0x20] sm:$0xff] %v5348_v32  ;;  %1938 = vst [vmem:[#allocation2 + $0x28] sm:$0x3] %v5348_v32 }
 0x152   : > { %v4044_v0 = vpop.eup %4043  ;;  %3854 = vmatprep.mubr.msk.bf16.mxu1 %vm1769_vm4, %v1749_v18  ;;  %1941 = vst [vmem:[#allocation2 + $0x40] sm:$0xff] %v5348_v32  ;;  %1942 = vst [vmem:[#allocation2 + $0x48] sm:$0x3] %v5348_v32  ;;  %v4744_v18 = vsub.s32 0, %v4741_v14 }
 0x153   : > { %v4046_v37 = vpop.eup %4045  ;;  %3855 = vmatmul.mubr.msk.bf16.vlgmr.msra.gmra.mxu1 %vm1769_vm4, %v1750_v42  ;;  %v1745_v44 = vmul.f32 %v4044_v0, %v1689_v2  ;;  %1943 = vst [vmem:[#allocation2 + $0x50] sm:$0xff] %v5348_v32  ;;  %1944 = vst [vmem:[#allocation2 + $0x58] sm:$0x3] %v5348_v32  ;;  %3865 = vmatpush3.bf16.msra.mxu0 %v3932_v10 }
 0x154   : > { %v4048_v3 = vpop.eup %4047  ;;  %v1748_v24 = vmul.f32 %v4046_v37, %v1692_v21  ;;  %1945 = vst [vmem:[#allocation2 + $0x60] sm:$0xff] %v5348_v32  ;;  %1946 = vst [vmem:[#allocation2 + $0x68] sm:$0x3] %v5348_v32  ;;  %3866 = vmatprep.subr.bf16.mxu0 %v5348_v32  ;;  %v4747_v37 = vsub.s32 1, %v4741_v14 }
 0x155   : > { %v4050_v58 = vpop.eup %4049  ;;  %v1747_v8 = vmul.f32 %v4048_v3, %v1691_v17  ;;  %1947 = vst [vmem:[#allocation2 + $0x70] sm:$0xff] %v5348_v32  ;;  %1948 = vst [vmem:[#allocation2 + $0x78] sm:$0x3] %v5348_v32  ;;  %v1962_v3 = vld [vmem:[%s5328_s7] sm:$0xff] }
 0x156   : > { %v1746_v1 = vmul.f32 %v4050_v58, %v1690_v9  ;;  %1949 = vst [vmem:[#allocation2 + $0x80] sm:$0xff] %v5348_v32  ;;  %1950 = vst [vmem:[#allocation2 + $0x88] sm:$0x3] %v5348_v32  ;;  %v4757_v27 = vrot.slane %v1962_v3, %v4747_v37 }
 0x157   : > { %v1752_v23 = vpack.c.bf16 %v1748_v24, %v1747_v8  ;;  %1951 = vst [vmem:[#allocation2 + $0x90] sm:$0xff] %v5348_v32  ;;  %1952 = vst [vmem:[#allocation2 + $0x98] sm:$0x3] %v5348_v32  ;;  %3867 = vmatpush3.bf16.msra.mxu0 %v3933_v20  ;;  %v1992_v8 = vld [vmem:[#allocation2 + $0x1] sm:$0xff] }
 0x158   : > { %v1751_v47 = vpack.c.bf16 %v1746_v1, %v1745_v44  ;;  %3868 = vmatprep.subr.bf16.mxu0 %v5348_v32  ;;  %5369 = vst [vmem:[#allocation3_spill] sm:$0xff] %v4741_v14  ;;  %5370 = vst [vmem:[#allocation4_spill] sm:$0xff] %v4747_v37  ;;  %v4753_v44 = vrot.slane %v1962_v3, %v4744_v18  ;;  %v5347_v1 = vsub.s32 2, %v4741_v14 }
 0x15a   : > { %3858 = vmatprep.mubr.msk.bf16.mxu1 %vm1769_vm4, %v1751_v47 }
 0x15b   : > { %3859 = vmatmul.mubr.msk.bf16.gmra.mxu1 %vm1769_vm4, %v1752_v23  ;;  %3869 = vmatpush3.bf16.msra.mxu0 %v3934_v48  ;;  %v4761_v48 = vrot.slane %v1962_v3, %v5347_v1 }
 0x15c   : > { %3886 = vmatprep.mubr.msk.bf16.mxu1 %vm4197_vm5, %v5348_v32  ;;  %3870 = vmatprep.subr.bf16.mxu0 %v5348_v32 }
 0x15f   : > { %3871 = vmatpush3.bf16.msra.mxu0 %v3935_v30  ;;  %v1976_v30 = vmul.f32 0.0, %v4753_v44 }
 0x160   : > { %3872 = vmatprep.subr.bf16.mxu0 %v5348_v32 }
 0x163   : > { %3873 = vmatpush3.bf16.msra.mxu0 %v3936_v61  ;;  %v2004_v61 = vmul.f32 %v4757_v27, %v1992_v8 }
 0x164   : > { %3874 = vmatprep.subr.bf16.mxu0 %v5348_v32 }
 0x167   : > { %3875 = vmatpush3.bf16.msra.mxu0 %v3937_v40  ;;  %v2020_v40 = vld [vmem:[#allocation2 + $0x2] sm:$0xff] }
 0x168   : > { %3876 = vmatprep.subr.bf16.mxu0 %v5348_v32 }
 0x16b   : > { %3877 = vmatpush3.bf16.msra.mxu0 %v3938_v6 }
 0x213   : > { %v3856_v63 = vpop.f32.mrf.mxu1 }
 0x214   : > { %v1856_v7 = vmul.f32 %v3856_v63, %v3545_v12  ;;  %v2171_v63 = vsub.s32 7, %v4741_v14 }
 0x215   : > { %v1816_v36 = vpop.f32.mrf.mxu1 }
 0x216   : > { %v4716_v26 = vadd.f32 %v3546_v5, %v1856_v7  ;;  %v1854_v17 = vmul.f32 %v3545_v12, %v1816_v36  ;;  %v2143_v36 = vsub.s32 6, %v4741_v14 }
 0x217   : > { %v3857_v33 = vpop.f32.mrf.mxu1 }
 0x218   : > { %v3549_v29 = vmul.f32 -1.442695, %v4716_v26  ;;  %v4719_v60 = vadd.f32 %v3546_v5, %v1854_v17  ;;  %v1857_v22 = vmul.f32 %v3857_v33, %v3545_v12  ;;  %v2058_v33 = vsub.s32 3, %v4741_v14 }
 0x219   : > { %v1819_v62 = vpop.f32.mrf.mxu1 }
 0x21a   : > { %4051 = vpow2.f32 %v3549_v29  ;;  %v3547_v2 = vmul.f32 -1.442695, %v4719_v60  ;;  %v4722_v21 = vadd.f32 %v3546_v5, %v1857_v22  ;;  %v1855_v46 = vmul.f32 %v3545_v12, %v1819_v62 }
 0x21b   : > { %v3860_v50 = vpop.f32.mrf.mxu1  ;;  %v2114_v29 = vsub.s32 5, %v4741_v14  ;;  %v2012_v22 = vadd.f32 %v2004_v61, %v1976_v30  ;;  %v2032_v62 = vmul.f32 %v4761_v48, %v2020_v40 }
 0x21c   : > { %4053 = vpow2.f32 %v3547_v2  ;;  %v3550_v19 = vmul.f32 -1.442695, %v4722_v21  ;;  %v4725_v9 = vadd.f32 %v3546_v5, %v1855_v46  ;;  %v1860_v25 = vmul.f32 %v3860_v50, %v3545_v12 }
 0x21d   : > { %v1832_v38 = vpop.f32.mrf.mxu1 }
 0x21e   : > { %4055 = vpow2.f32 %v3550_v19  ;;  %v3548_v39 = vmul.f32 -1.442695, %v4725_v9  ;;  %v4728_v31 = vadd.f32 %v3546_v5, %v1860_v25  ;;  %v1858_v11 = vmul.f32 %v3545_v12, %v1832_v38  ;;  %v2196_v25 = vld [vmem:[#allocation2 + $0x92] sm:$0xff] }
 0x21f   : > { %v3861_v43 = vpop.f32.mrf.mxu1  ;;  %v4775_v19 = vrot.slane %v1962_v3, %v2171_v63  ;;  %v4777_v38 = vrot.slane %v1962_v3, %v2143_v36 }
 0x220   : > { %4057 = vpow2.f32 %v3548_v39  ;;  %v3553_v41 = vmul.f32 -1.442695, %v4728_v31  ;;  %v4731_v28 = vadd.f32 %v3546_v5, %v1858_v11  ;;  %v1861_v51 = vmul.f32 %v3861_v43, %v3545_v12 }
 0x221   : > { %v1835_v4 = vpop.f32.mrf.mxu1  ;;  %v4780_v43 = vrot.slane %v1962_v3, %v2058_v33 }
 0x222   : > { %4059 = vpow2.f32 %v3553_v41  ;;  %v3551_v55 = vmul.f32 -1.442695, %v4731_v28  ;;  %v4734_v53 = vadd.f32 %v3546_v5, %v1861_v51  ;;  %v1859_v35 = vmul.f32 %v3545_v12, %v1835_v4 }
 0x223   : > { %v2086_v12 = vsub.s32 4, %v4741_v14  ;;  %v4782_v41 = vrot.slane %v1962_v3, %v2114_v29  ;;  %v2040_v51 = vadd.f32 %v2032_v62, %v2012_v22 }
 0x224   : > { %4061 = vpow2.f32 %v3551_v55  ;;  %v3554_v54 = vmul.f32 -1.442695, %v4734_v53  ;;  %v4737_v45 = vadd.f32 %v3546_v5, %v1859_v35  ;;  %v4791_v55 = vmul.f32 0.0, %v4777_v38 }
 0x225   : > { %v4773_v50 = vrot.slane %v1962_v3, %v2086_v12 }
 0x226   : > { %4063 = vpow2.f32 %v3554_v54  ;;  %v3552_v52 = vmul.f32 -1.442695, %v4737_v45 }
 0x227   : > { %v4052_v49 = vpop.eup %4051 }
 0x228   : > { %v1903_v34 = vadd.f32 1.0, %v4052_v49  ;;  %4065 = vpow2.f32 %v3552_v52 }
 0x229   : > { %v4054_v59 = vpop.eup %4053 }
 0x22a   : > { %4067 = vrcp.f32 %v1903_v34  ;;  %v1901_v57 = vadd.f32 1.0, %v4054_v59 }
 0x22b   : > { %v4056_v13 = vpop.eup %4055 }
 0x22c   : > { %4069 = vrcp.f32 %v1901_v57  ;;  %v1904_v15 = vadd.f32 1.0, %v4056_v13 }
 0x22d   : > { %v4058_v16 = vpop.eup %4057 }
 0x22e   : > { %4071 = vrcp.f32 %v1904_v15  ;;  %v1902_v42 = vadd.f32 1.0, %v4058_v16 }
 0x22f   : > { %v4060_v0 = vpop.eup %4059 }
 0x230   : > { %4073 = vrcp.f32 %v1902_v42  ;;  %v1907_v58 = vadd.f32 1.0, %v4060_v0 }
 0x231   : > { %v4062_v24 = vpop.eup %4061 }
 0x232   : > { %4075 = vrcp.f32 %v1907_v58  ;;  %v1905_v47 = vadd.f32 1.0, %v4062_v24 }
 0x233   : > { %v4064_v23 = vpop.eup %4063 }
 0x234   : > { %4077 = vrcp.f32 %v1905_v47  ;;  %v1908_v10 = vadd.f32 1.0, %v4064_v23 }
 0x235   : > { %v4066_v20 = vpop.eup %4065 }
 0x236   : > { %4079 = vrcp.f32 %v1908_v10  ;;  %v1906_v5 = vadd.f32 1.0, %v4066_v20 }
 0x237   : > { %v4068_v6 = vpop.eup %4067 }
 0x238   : > { %v1927_v7 = vmul.f32 %v4068_v6, %v4716_v26  ;;  %4081 = vrcp.f32 %v1906_v5  ;;  %v2168_v26 = vld [vmem:[#allocation2 + $0x91] sm:$0xff] }
 0x239   : > { %v4070_v17 = vpop.eup %4069  ;;  %v4794_v35 = vmul.f32 %v4775_v19, %v2168_v26 }
 0x23a   : > { %1956 = vst [vmem:[#allocation2 + $0x31] sm:$0xff] %v1927_v7  ;;  %v1925_v2 = vmul.f32 %v4070_v17, %v4719_v60  ;;  %v4787_v60 = vld [vmem:[%s5328_s7 + $0x8] ss:$0 sm:$0xff]  ;;  %v2007_v52 = vmul.f32 %v4757_v27, %v1927_v7  ;;  %v4801_v49 = vmul.f32 %v4773_v50, %v1927_v7  ;;  %v4804_v34 = vmul.f32 %v4775_v19, %v1927_v7 }
 0x23b   : > { %v4072_v46 = vpop.eup %4071 }
 0x23c   : > { %1954 = vst [vmem:[#allocation2 + $0x11] sm:$0xff] %v1925_v2  ;;  %v1928_v39 = vmul.f32 %v4072_v46, %v4722_v21  ;;  %v4797_v21 = vmul.f32 %v4787_v60, %v2196_v25  ;;  %v2088_v59 = vmul.f32 %v4773_v50, %v1925_v2 }
 0x23d   : > { %v4074_v11 = vpop.eup %4073 }
 0x23e   : > { %1957 = vst [vmem:[#allocation2 + $0x41] sm:$0xff] %v1928_v39  ;;  %v1926_v4 = vmul.f32 %v4074_v11, %v4725_v9  ;;  %v2005_v9 = vmul.f32 %v4757_v27, %v1925_v2  ;;  %v2008_v57 = vmul.f32 %v4757_v27, %v1928_v39  ;;  %v4810_v13 = vmul.f32 %v4773_v50, %v1928_v39 }
 0x23f   : > { %v4076_v54 = vpop.eup %4075  ;;  %v4823_v8 = vmul.f32 %v4775_v19, %v1928_v39 }
 0x240   : > { %1955 = vst [vmem:[#allocation2 + $0x21] sm:$0xff] %v1926_v4  ;;  %v4813_v15 = vmul.f32 %v4076_v54, %v4728_v31  ;;  %v2006_v3 = vmul.f32 %v4757_v27, %v1926_v4  ;;  %v2089_v58 = vmul.f32 %v4773_v50, %v1926_v4  ;;  %v4820_v24 = vmul.f32 %v4775_v19, %v1926_v4 }
 0x241   : > { %v4078_v16 = vpop.eup %4077  ;;  %v1967_v42 = vld [vmem:[#allocation2 + $0x30] sm:$0xff] }
 0x242   : > { %v4815_v0 = vld [vmem:[#allocation2 + $0x32] sm:$0xff]  ;;  %v1979_v47 = vmul.f32 %v4753_v44, %v1967_v42  ;;  %v2062_v23 = vmul.f32 %v4780_v43, %v1967_v42  ;;  %1960 = vst [vmem:[#allocation2 + $0x71] sm:$0xff] %v4813_v15  ;;  %v4835_v30 = vmul.f32 %v4777_v38, %v1967_v42  ;;  %v2011_v6 = vmul.f32 %v4757_v27, %v4813_v15 }
 0x243   : > { %v2035_v31 = vmul.f32 %v4761_v48, %v4815_v0  ;;  %v4831_v10 = vmul.f32 %v4782_v41, %v4815_v0  ;;  %v4080_v20 = vpop.eup %4079  ;;  %v1965_v61 = vld [vmem:[#allocation2 + $0x10] sm:$0xff]  ;;  %v4840_v12 = vmul.f32 %v4078_v16, %v4731_v28  ;;  %v4844_v63 = vmul.f32 %v4773_v50, %v4813_v15 }
 0x244   : > { %v2021_v40 = vld [vmem:[#allocation2 + $0x12] sm:$0xff]  ;;  %v2015_v5 = vadd.f32 %v2007_v52, %v1979_v47  ;;  %v1977_v7 = vmul.f32 %v4753_v44, %v1965_v61  ;;  %v2060_v17 = vmul.f32 %v4780_v43, %v1965_v61  ;;  %v4858_v2 = vmul.f32 %v4080_v20, %v4734_v53 }
 0x245   : > { %v2033_v36 = vmul.f32 %v4761_v48, %v2021_v40  ;;  %v2116_v33 = vmul.f32 %v4782_v41, %v2021_v40  ;;  %v1968_v29 = vld [vmem:[#allocation2 + $0x40] sm:$0xff]  ;;  %1958 = vst [vmem:[#allocation2 + $0x51] sm:$0xff] %v4840_v12  ;;  %v2009_v28 = vmul.f32 %v4757_v27, %v4840_v12  ;;  %v2092_v62 = vmul.f32 %v4773_v50, %v4840_v12  ;;  %v4082_v53 = vpop.eup %4081 }
 0x246   : > { %v4850_v22 = vld [vmem:[#allocation2 + $0x42] sm:$0xff]  ;;  %v2043_v46 = vadd.f32 %v2035_v31, %v2015_v5  ;;  %v2013_v26 = vadd.f32 %v2005_v9, %v1977_v7  ;;  %v2068_v25 = vadd.f32 %v2060_v17, %v2040_v51  ;;  %v1980_v39 = vmul.f32 %v4753_v44, %v1968_v29  ;;  %1961 = vst [vmem:[#allocation2 + $0x81] sm:$0xff] %v4858_v2 }
 0x247   : > { %v2036_v11 = vmul.f32 %v4761_v48, %v4850_v22  ;;  %v2063_v4 = vmul.f32 %v4780_v43, %v1968_v29  ;;  %v2119_v54 = vmul.f32 %v4782_v41, %v4850_v22  ;;  %v4867_v52 = vmul.f32 %v4777_v38, %v1968_v29  ;;  %v1966_v16 = vld [vmem:[#allocation2 + $0x20] sm:$0xff] }
 0x248   : > { %v4869_v42 = vld [vmem:[#allocation2 + $0x22] sm:$0xff]  ;;  %v2041_v51 = vadd.f32 %v2033_v36, %v2013_v26  ;;  %v2096_v9 = vadd.f32 %v2088_v59, %v2068_v25  ;;  %v2016_v47 = vadd.f32 %v2008_v57, %v1980_v39  ;;  %v1978_v31 = vmul.f32 %v4753_v44, %v1966_v16 }
 0x249   : > { %v2071_v20 = vadd.f32 %v2063_v4, %v2043_v46  ;;  %v2034_v61 = vmul.f32 %v4761_v48, %v4869_v42  ;;  %v2061_v40 = vmul.f32 %v4780_v43, %v1966_v16  ;;  %v2117_v5 = vmul.f32 %v4782_v41, %v4869_v42  ;;  %v1971_v7 = vld [vmem:[#allocation2 + $0x70] sm:$0xff] }
 0x24a   : > { %v4878_v17 = vld [vmem:[#allocation2 + $0x72] sm:$0xff]  ;;  %v2124_v29 = vadd.f32 %v2116_v33, %v2096_v9  ;;  %v2044_v56 = vadd.f32 %v2036_v11, %v2016_v47  ;;  %v2014_v1 = vadd.f32 %v2006_v3, %v1978_v31  ;;  %v2145_v59 = vmul.f32 %v4777_v38, %v1966_v16 }
 0x24b   : > { %v2069_v57 = vadd.f32 %v2061_v40, %v2041_v51  ;;  %v1983_v36 = vmul.f32 %v4753_v44, %v1971_v7  ;;  %v1930_v46 = vmul.f32 %v4082_v53, %v4737_v45  ;;  %v2039_v26 = vmul.f32 %v4761_v48, %v4878_v17 }
 0x24c   : > { %v2042_v25 = vadd.f32 %v2034_v61, %v2014_v1  ;;  %v1969_v39 = vld [vmem:[#allocation2 + $0x50] sm:$0xff]  ;;  %v4888_v32 = vmul.f32 %v4780_v43, %v1971_v7  ;;  %v2095_v3 = vmul.f32 %v4773_v50, %v4858_v2  ;;  %v2099_v33 = vadd.f32 %v4810_v13, %v2071_v20 }
 0x24d   : > { %v4885_v4 = vld [vmem:[#allocation2 + $0x52] sm:$0xff]  ;;  %v2097_v11 = vadd.f32 %v2089_v58, %v2069_v57  ;;  %v1981_v16 = vmul.f32 %v4753_v44, %v1969_v39  ;;  %v2064_v53 = vmul.f32 %v4780_v43, %v1969_v39  ;;  %1959 = vst [vmem:[#allocation2 + $0x61] sm:$0xff] %v1930_v46  ;;  %v2010_v51 = vmul.f32 %v4757_v27, %v1930_v46  ;;  %v2055_v47 = vld [vmem:[#allocation2 + $0x80] sm:$0xff] }
 0x24e   : > { %v2037_v45 = vmul.f32 %v4761_v48, %v4885_v4  ;;  %v2070_v1 = vadd.f32 %v2062_v23, %v2042_v25  ;;  %v2019_v9 = vadd.f32 %v2011_v6, %v1983_v36  ;;  %v2093_v31 = vmul.f32 %v4773_v50, %v1930_v46  ;;  %v2111_v61 = vld [vmem:[#allocation2 + $0x82] sm:$0xff] }
 0x24f   : > { %v2125_v40 = vadd.f32 %v2117_v5, %v2097_v11  ;;  %v2017_v14 = vadd.f32 %v2009_v28, %v1981_v16  ;;  %v2067_v13 = vmul.f32 %v4780_v43, %v2055_v47  ;;  %v2072_v58 = vadd.f32 %v2064_v53, %v2044_v56 }
 0x250   : > { %v2047_v20 = vadd.f32 %v2039_v26, %v2019_v9  ;;  %v2098_v57 = vadd.f32 %v4801_v49, %v2070_v1  ;;  %v2120_v37 = vmul.f32 %v4782_v41, %v4885_v4  ;;  %v2122_v23 = vmul.f32 %v4782_v41, %v4878_v17 }
 0x251   : > { %v2045_v27 = vadd.f32 %v2037_v45, %v2017_v14  ;;  %v2100_v6 = vadd.f32 %v2092_v62, %v2072_v58  ;;  %v2123_v36 = vmul.f32 %v4782_v41, %v2111_v61  ;;  %v2127_v50 = vadd.f32 %v2119_v54, %v2099_v33 }
 0x252   : > { %v2075_v25 = vadd.f32 %v2067_v13, %v2047_v20  ;;  %v2126_v28 = vadd.f32 %v4831_v10, %v2098_v57  ;;  %v2148_v5 = vmul.f32 %v4777_v38, %v1969_v39  ;;  %v2150_v56 = vmul.f32 %v4777_v38, %v1971_v7 }
 0x253   : > { %v2128_v26 = vadd.f32 %v2120_v37, %v2100_v6  ;;  %v2151_v49 = vmul.f32 %v4777_v38, %v2055_v47  ;;  %v2153_v11 = vadd.f32 %v2145_v59, %v2124_v29  ;;  %v2154_v16 = vadd.f32 %v4835_v30, %v2125_v40 }
 0x254   : > { %v1970_v53 = vld [vmem:[#allocation2 + $0x60] sm:$0xff]  ;;  %v2103_v14 = vadd.f32 %v2095_v3, %v2075_v25  ;;  %v2155_v62 = vadd.f32 %v4867_v52, %v2126_v28  ;;  %v2156_v45 = vadd.f32 %v2148_v5, %v2127_v50  ;;  %v2176_v54 = vmul.f32 %v4775_v19, %v4840_v12 }
 0x255   : > { %v2026_v1 = vld [vmem:[#allocation2 + $0x62] sm:$0xff]  ;;  %v1982_v10 = vmul.f32 %v4753_v44, %v1970_v53  ;;  %v2065_v37 = vmul.f32 %v4780_v43, %v1970_v53  ;;  %v2149_v30 = vmul.f32 %v4777_v38, %v1970_v53  ;;  %v2177_v59 = vmul.f32 %v4775_v19, %v1930_v46 }
 0x256   : > { %v2038_v39 = vmul.f32 %v4761_v48, %v2026_v1  ;;  %v2121_v7 = vmul.f32 %v4782_v41, %v2026_v1  ;;  %v2131_v29 = vadd.f32 %v2123_v36, %v2103_v14  ;;  %v2178_v52 = vmul.f32 %v4775_v19, %v4813_v15 }
 0x257   : > { %v2018_v3 = vadd.f32 %v2010_v51, %v1982_v10  ;;  %v2073_v33 = vadd.f32 %v2065_v37, %v2045_v27  ;;  %v2179_v12 = vmul.f32 %v4775_v19, %v4858_v2  ;;  %v2181_v44 = vadd.f32 %v4820_v24, %v2153_v11 }
 0x258   : > { %v2157_v48 = vadd.f32 %v2149_v30, %v2128_v26  ;;  %v2160_v43 = vadd.f32 %v4791_v55, %v2131_v29  ;;  %v2182_v41 = vadd.f32 %v4804_v34, %v2154_v16  ;;  %v2183_v9 = vadd.f32 %v4823_v8, %v2155_v62 }
 0x259   : > { %v2046_v38 = vadd.f32 %v2038_v39, %v2018_v3  ;;  %v2101_v47 = vadd.f32 %v2093_v31, %v2073_v33  ;;  %v2184_v46 = vadd.f32 %v2176_v54, %v2156_v45  ;;  %v2201_v15 = vmul.f32 %v4787_v60, %v4869_v42  ;;  %v3556_v42 = vld [vmem:[%s5329_s8] ss:$0 sm:$0xff] }
 0x25a   : > { %v2185_v51 = vadd.f32 %v2177_v59, %v2157_v48  ;;  %v2188_v40 = vadd.f32 %v4794_v35, %v2160_v43  ;;  %v2202_v19 = vmul.f32 %v4787_v60, %v4815_v0  ;;  %v2203_v24 = vmul.f32 %v4787_v60, %v4850_v22 }
 0x25b   : > { %v2074_v55 = vadd.f32 %v4888_v32, %v2046_v38  ;;  %v2129_v34 = vadd.f32 %v2121_v7, %v2101_v47  ;;  %v2204_v8 = vmul.f32 %v4787_v60, %v4885_v4  ;;  %v2205_v2 = vmul.f32 %v4787_v60, %v2026_v1  ;;  %v3557_v4 = vld [vmem:[%s5330_s9] ss:$0 sm:$0xff] }
 0x25c   : > { %v2206_v35 = vmul.f32 %v4787_v60, %v4878_v17  ;;  %v2207_v0 = vmul.f32 %v4787_v60, %v2111_v61  ;;  %v2209_v31 = vadd.f32 %v2201_v15, %v2181_v44  ;;  %v2210_v13 = vadd.f32 %v2202_v19, %v2182_v41 }
 0x25d   : > { %v2102_v22 = vadd.f32 %v4844_v63, %v2074_v55  ;;  %v2158_v32 = vadd.f32 %v2150_v56, %v2129_v34  ;;  %v2211_v58 = vadd.f32 %v2203_v24, %v2183_v9  ;;  %v2212_v20 = vadd.f32 %v2204_v8, %v2184_v46 }
 0x25e   : > { %v2213_v57 = vadd.f32 %v2205_v2, %v2185_v51  ;;  %v2216_v27 = vadd.f32 %v4797_v21, %v2188_v40  ;;  %v2224_v6 = vmul.f32 %v3556_v42, %v2209_v31  ;;  %v2225_v36 = vmul.f32 %v3556_v42, %v2210_v13 }
 0x25f   : > { %v2130_v50 = vadd.f32 %v2122_v23, %v2102_v22  ;;  %v2186_v17 = vadd.f32 %v2178_v52, %v2158_v32  ;;  %v2226_v25 = vmul.f32 %v3556_v42, %v2211_v58  ;;  %v2227_v60 = vmul.f32 %v3556_v42, %v2212_v20 }
 0x260   : > { %v2228_v61 = vmul.f32 %v3556_v42, %v2213_v57  ;;  %v2231_v28 = vmul.f32 %v3556_v42, %v2216_v27  ;;  %v2239_v5 = vadd.f32 %v3557_v4, %v2224_v6  ;;  %v2240_v63 = vadd.f32 %v3557_v4, %v2225_v36 }
 0x261   : > { %v2159_v56 = vadd.f32 %v2151_v49, %v2130_v50  ;;  %v2214_v26 = vadd.f32 %v2206_v35, %v2186_v17  ;;  %v2241_v11 = vadd.f32 %v3557_v4, %v2226_v25  ;;  %v2242_v16 = vadd.f32 %v3557_v4, %v2227_v60 }
 0x262   : > { %v2243_v53 = vadd.f32 %v3557_v4, %v2228_v61  ;;  %v4950_v1 = vadd.f32 %v3557_v4, %v2231_v28  ;;  %v3558_v14 = vmul.f32 -1.442695, %v2239_v5  ;;  %v3559_v62 = vmul.f32 -1.442695, %v2240_v63 }
 0x263   : > { %v2187_v21 = vadd.f32 %v2179_v12, %v2159_v56  ;;  %v2229_v45 = vmul.f32 %v3556_v42, %v2214_v26  ;;  %v3560_v54 = vmul.f32 -1.442695, %v2241_v11  ;;  %v3561_v23 = vmul.f32 -1.442695, %v2242_v16 }
 0x264   : > { %4083 = vpow2.f32 %v3558_v14  ;;  %v3562_v10 = vmul.f32 -1.442695, %v2243_v53  ;;  %v3565_v29 = vmul.f32 -1.442695, %v4950_v1  ;;  %v5371_v14 = vmov 0.0  }
 0x265   : > { %v2215_v39 = vadd.f32 %v2207_v0, %v2187_v21  ;;  %v2244_v37 = vadd.f32 %v3557_v4, %v2229_v45  ;;  %4085 = vpow2.f32 %v3559_v62  ;;  %v2335_v62 = vld [vmem:[%s5332_s11] sm:$0x1] }
 0x266   : > { %4087 = vpow2.f32 %v3560_v54 }
 0x267   : > { %v2230_v7 = vmul.f32 %v3556_v42, %v2215_v39  ;;  %4089 = vpow2.f32 %v3561_v23  ;;  %v3563_v49 = vmul.f32 -1.442695, %v2244_v37 }
 0x268   : > { %4091 = vpow2.f32 %v3562_v10 }
 0x269   : > { %v2245_v30 = vadd.f32 %v3557_v4, %v2230_v7  ;;  %4093 = vpow2.f32 %v3563_v49 }
 0x26a   : > { %4095 = vpow2.f32 %v3565_v29 }
 0x26b   : > { %v3564_v59 = vmul.f32 -1.442695, %v2245_v30 }
 0x26d   : > { %4097 = vpow2.f32 %v3564_v59  ;;  %v3941_v59 = vld [vmem:[%s5335_s14 + $0x38] sm:$0xff]  }
 0x271   : > { %v4084_v52 = vpop.eup %4083 }
 0x272   : > { %v4086_v3 = vpop.eup %4085  ;;  %v2271_v33 = vadd.f32 1.0, %v4084_v52  ;;  %v3942_v52 = vld [vmem:[%s5335_s14 + $0x30] sm:$0xff]  }
 0x273   : > { %v4088_v12 = vpop.eup %4087  ;;  %v2272_v44 = vadd.f32 1.0, %v4086_v3  ;;  %v3943_v3 = vld [vmem:[%s5335_s14 + $0x28] sm:$0xff]  }
 0x274   : > { %v4090_v48 = vpop.eup %4089  ;;  %v2273_v43 = vadd.f32 1.0, %v4088_v12  ;;  %4099 = vrcp.f32 %v2271_v33  ;;  %v3944_v33 = vld [vmem:[%s5335_s14 + $0x20] sm:$0xff]   ;;  %v3945_v12 = vld [vmem:[%s5335_s14 + $0x18] sm:$0xff]  }
 0x275   : > { %v4092_v41 = vpop.eup %4091  ;;  %v2274_v9 = vadd.f32 1.0, %v4090_v48  ;;  %4101 = vrcp.f32 %v2272_v44  ;;  %v3946_v44 = vld [vmem:[%s5335_s14 + $0x10] sm:$0xff]   ;;  %v3947_v48 = vld [vmem:[%s5335_s14 + $0x8] sm:$0xff]  }
 0x276   : > { %v4094_v38 = vpop.eup %4093  ;;  %v2275_v47 = vadd.f32 1.0, %v4092_v41  ;;  %4103 = vrcp.f32 %v2273_v43  ;;  %v3948_v43 = vld [vmem:[%s5335_s14] sm:$0xff]  }
 0x277   : > { %v2276_v46 = vadd.f32 1.0, %v4094_v38  ;;  %4105 = vrcp.f32 %v2274_v9  ;;  %v4096_v15 = vpop.eup %4095  ;;  %v2436_v41 = vld [vmem:[%s5334_s13] sm:$0x1] }
 0x278   : > { %4107 = vrcp.f32 %v2275_v47  ;;  %v2278_v19 = vadd.f32 1.0, %v4096_v15 }
 0x279   : > { %4109 = vrcp.f32 %v2276_v46 }
 0x27a   : > { %v4098_v51 = vpop.eup %4097 }
 0x27b   : > { %v2277_v40 = vadd.f32 1.0, %v4098_v51 }
 0x27d   : > { %4111 = vrcp.f32 %v2277_v40 }
 0x27e   : > { %4113 = vrcp.f32 %v2278_v19 }
 0x281   : > { %v4100_v24 = vpop.eup %4099 }
 0x282   : > { %v4102_v55 = vpop.eup %4101  ;;  %v4953_v8 = vmul.f32 %v4100_v24, %v2239_v5 }
 0x283   : > { %v4104_v34 = vpop.eup %4103  ;;  %v4955_v2 = vmul.f32 %v4102_v55, %v2240_v63 }
 0x284   : > { %v4106_v42 = vpop.eup %4105  ;;  %v4957_v35 = vmul.f32 %v4104_v34, %v2241_v11 }
 0x285   : > { %v2303_v0 = vadd.f32 %v4955_v2, %v4953_v8  ;;  %v4108_v31 = vpop.eup %4107  ;;  %v4961_v13 = vmul.f32 %v4106_v42, %v2242_v16 }
 0x286   : > { %v4110_v32 = vpop.eup %4109  ;;  %v4964_v58 = vmul.f32 %v4108_v31, %v2243_v53  ;;  %v3939_v53 = vld [vmem:[%s5333_s12 + $0x8] sm:$0xff]  }
 0x287   : > { %v2304_v22 = vadd.f32 %v2303_v0, %v4957_v35  ;;  %v4967_v57 = vmul.f32 %v4110_v32, %v2244_v37  ;;  %3883 = vmatpush3.bf16.msra.mxu1 %v3939_v53 }
 0x288   : > { %3884 = vmatprep.subr.bf16.mxu1 %v5371_v14 }
 0x289   : > { %v2305_v20 = vadd.f32 %v2304_v22, %v4961_v13 }
 0x28a   : > { %v4112_v4 = vpop.eup %4111 }
 0x28b   : > { %v4969_v27 = vmul.f32 %v4112_v4, %v2245_v30  ;;  %v2306_v6 = vadd.f32 %v2305_v20, %v4964_v58  ;;  %v4114_v36 = vpop.eup %4113 }
 0x28c   : > { %v4974_v17 = vmul.f32 %v4114_v36, %v4950_v1  ;;  %v3940_v1 = vld [vmem:[%s5333_s12] sm:$0xff]  }
 0x28d   : > { %v2307_v50 = vadd.f32 %v2306_v6, %v4967_v57  ;;  %3885 = vmatpush3.bf16.msra.mxu1 %v3940_v1 }
 0x28e   : > { %3890 = vmatprep.subr.bf16.mxu1 %v3941_v59 }
 0x28f   : > { %v2308_v25 = vadd.f32 %v2307_v50, %v4969_v27 }
 0x291   : > { %v2309_v60 = vadd.f32 %v2308_v25, %v4974_v17  ;;  %v3587_v25 = vld [vmem:[%s5336_s15] ss:$0 sm:$0xff] }
 0x293   : > { %v2310_v61 = vrot.slane %v2309_v60, 4 }
 0x295   : > { %v2311_v28 = vadd.f32 %v2310_v61, %v2309_v60 }
 0x297   : > { %v2312_v5 = vrot.slane %v2311_v28, 2 }
 0x299   : > { %v2313_v63 = vadd.f32 %v2312_v5, %v2311_v28 }
 0x29b   : > { %v2314_v56 = vrot.slane %v2313_v63, 1 }
 0x29d   : > { %v2315_v26 = vadd.f32 %v2314_v56, %v2313_v63  ;;  %v3588_v63 = vld [vmem:[%s5337_s16] ss:$0 sm:$0xff] }
 0x29f   : > { %v2317_v11 = vmul.f32 0.015625, %v2315_v26 }
 0x2a1   : > { %v2318_v16 = vpack.c.bf16 %v2317_v11, %v2317_v11 }
 0x2a3   : > { %3879 = vmatmul.mubr.bf16.vlgmr.msra.gmra.mxu0 %v2318_v16 }
 0x363   : > { %v2418_v21 = vpop.f32.mrf.mxu0 }
 0x364   : > { %v2419_v45 = vadd.f32 %v2418_v21, %v2335_v62 }
 0x365   : > { %v3880_v54 = vpop.f32.mrf.mxu0 }
 0x366   : > { %v3574_v23 = vmul.f32 -1.442695, %v2419_v45 }
 0x367   : > { %v2421_v10 = vpop.f32.mrf.mxu0 }
 0x368   : > { %4115 = vpow2.f32 %v3574_v23 }
 0x369   : > { %v3881_v39 = vpop.f32.mrf.mxu0 }
 0x375   : > { %v4116_v37 = vpop.eup %4115 }
 0x376   : > { %v2427_v7 = vadd.f32 1.0, %v4116_v37 }
 0x378   : > { %4117 = vrcp.f32 %v2427_v7 }
 0x385   : > { %v4118_v49 = vpop.eup %4117 }
 0x386   : > { %v2430_v29 = vmul.f32 %v4118_v49, %v2419_v45 }
 0x388   : > { %v2431_v30 = vpack.c.bf16 %v2430_v29, %v2430_v29 }
 0x38a   : > { %3887 = vmatmul.mubr.msk.bf16.vlgmr.msra.gmra.mxu1 %vm1769_vm4, %v2431_v30 }
 0x38b   : > { %3891 = vmatpush3.bf16.msra.mxu1 %v3941_v59 }
 0x38c   : > { %3892 = vmatprep.subr.bf16.mxu1 %v3942_v52 }
 0x38f   : > { %3893 = vmatpush3.bf16.msra.mxu1 %v3942_v52 }
 0x390   : > { %3894 = vmatprep.subr.bf16.mxu1 %v3943_v3 }
 0x393   : > { %3895 = vmatpush3.bf16.msra.mxu1 %v3943_v3 }
 0x394   : > { %3896 = vmatprep.subr.bf16.mxu1 %v3944_v33 }
 0x397   : > { %3897 = vmatpush3.bf16.msra.mxu1 %v3944_v33  ;;  %v3957_v33 = vld [vmem:[%s5341_s20 + $0xac] ss:$12 sps:$4 sm:$0xff]  }
 0x398   : > { %3898 = vmatprep.subr.bf16.mxu1 %v3945_v12 }
 0x39b   : > { %3899 = vmatpush3.bf16.msra.mxu1 %v3945_v12  ;;  %v3955_v12 = vld [vmem:[%s5341_s20 + $0xa8] ss:$12 sps:$4 sm:$0xff]  }
 0x39c   : > { %3900 = vmatprep.subr.bf16.mxu1 %v3946_v44 }
 0x39f   : > { %3901 = vmatpush3.bf16.msra.mxu1 %v3946_v44  ;;  %v3960_v44 = vld [vmem:[%s5341_s20 + $0x94] ss:$12 sps:$4 sm:$0xff]  }
 0x3a0   : > { %3902 = vmatprep.subr.bf16.mxu1 %v3947_v48 }
 0x3a3   : > { %3903 = vmatpush3.bf16.msra.mxu1 %v3947_v48  ;;  %v3958_v48 = vld [vmem:[%s5341_s20 + $0x90] ss:$12 sps:$4 sm:$0xff]  }
 0x3a4   : > { %3904 = vmatprep.subr.bf16.mxu1 %v3948_v43 }
 0x3a7   : > { %3905 = vmatpush3.bf16.msra.mxu1 %v3948_v43  ;;  %v3963_v43 = vld [vmem:[%s5341_s20 + $0x7c] ss:$12 sps:$4 sm:$0xff]  }
 0x44a   : > { %v2486_v9 = vpop.f32.mrf.mxu1 }
 0x44b   : > { %v2487_v38 = vadd.f32 %v2486_v9, %v2436_v41  ;;  %v3961_v41 = vld [vmem:[%s5341_s20 + $0x78] ss:$12 sps:$4 sm:$0xff]  }
 0x44c   : > { %v3888_v47 = vpop.f32.mrf.mxu1  ;;  %v3966_v9 = vld [vmem:[%s5341_s20 + $0x64] ss:$12 sps:$4 sm:$0xff]  }
 0x44d   : > { %v3578_v46 = vmul.f32 -1.442695, %v2487_v38  ;;  %v3964_v38 = vld [vmem:[%s5341_s20 + $0x60] ss:$12 sps:$4 sm:$0xff]  }
 0x44e   : > { %v2489_v15 = vpop.f32.mrf.mxu1  ;;  %v3969_v47 = vld [vmem:[%s5341_s20 + $0x4c] ss:$12 sps:$4 sm:$0xff]  }
 0x44f   : > { %4119 = vpow2.f32 %v3578_v46  ;;  %v3967_v46 = vld [vmem:[%s5341_s20 + $0x48] ss:$12 sps:$4 sm:$0xff]  }
 0x450   : > { %v3889_v51 = vpop.f32.mrf.mxu1  ;;  %v3972_v15 = vld [vmem:[%s5341_s20 + $0x34] ss:$12 sps:$4 sm:$0xff]  }
 0x451   : > { %v3970_v51 = vld [vmem:[%s5341_s20 + $0x30] ss:$12 sps:$4 sm:$0xff]  }
 0x45c   : > { %v4120_v40 = vpop.eup %4119 }
 0x45d   : > { %v2495_v19 = vadd.f32 1.0, %v4120_v40  ;;  %v3975_v40 = vld [vmem:[%s5341_s20 + $0x1c] ss:$12 sps:$4 sm:$0xff]  }
 0x45f   : > { %4121 = vrcp.f32 %v2495_v19  ;;  %v3973_v19 = vld [vmem:[%s5341_s20 + $0x18] ss:$12 sps:$4 sm:$0xff]  }
 0x46c   : > { %v4122_v24 = vpop.eup %4121 }
 0x46d   : > { %v2501_v55 = vrot.slane %v4122_v24, %v4744_v18  ;;  %v3978_v24 = vld [vmem:[%s5341_s20 + $0x4] ss:$12 sps:$4 sm:$0xff]  }
 0x46f   : > { %v2502_v34 = vmul.f32 %v2501_v55, %v4953_v8  ;;  %v2503_v42 = vmul.f32 %v2501_v55, %v4955_v2  ;;  %v2504_v0 = vmul.f32 %v2501_v55, %v4957_v35  ;;  %v2505_v31 = vmul.f32 %v2501_v55, %v4961_v13  ;;  %v3949_v2 = vld [vmem:[%s5338_s17 + $0x10] ss:$8 sps:$4 sm:$0xff]   ;;  %v3951_v35 = vld [vmem:[%s5338_s17 + $0x14] ss:$8 sps:$4 sm:$0xff]   ;;  %v3954_v13 = vld [vmem:[%s5338_s17 + $0x4] ss:$8 sps:$4 sm:$0xff]  }
 0x470   : > { %v2506_v22 = vmul.f32 %v2501_v55, %v4964_v58  ;;  %v2507_v32 = vmul.f32 %v2501_v55, %v4967_v57  ;;  %v2508_v36 = vmul.f32 %v2501_v55, %v4969_v27  ;;  %v2509_v8 = vmul.f32 %v2501_v55, %v4974_v17  ;;  %2725 = vmatprep.subr.bf16.mxu0 %v3951_v35  ;;  %v3952_v58 = vld [vmem:[%s5338_s17] ss:$8 sps:$4 sm:$0xff]  }
 0x471   : > { %v2510_v20 = vpack.c.bf16 %v2503_v42, %v2502_v34  ;;  %v2511_v4 = vpack.c.bf16 %v2505_v31, %v2504_v0  ;;  %2726 = vmatpush1.bf16.msra.mxu0 %v3949_v2  ;;  %v4198_v57 = vmov 0   ;;  %v3976_v55 = vld [vmem:[%s5341_s20] ss:$12 sps:$4 sm:$0xff]   ;;  %v3982_v42 = vld [vmem:[%s5341_s20 + $0x170] ss:$12 sps:$4 sm:$0xff]  }
 0x472   : > { %v2512_v6 = vpack.c.bf16 %v2507_v32, %v2506_v22  ;;  %v2513_v50 = vpack.c.bf16 %v2509_v8, %v2508_v36  ;;  %2727 = vmatprep.subr.bf16.mxu0 %v3954_v13  ;;  %2745 = vmatprep.mubr.bf16.mxu0 %v4198_v57  ;;  %v3981_v34 = vld [vmem:[%s5341_s20 + $0x16c] ss:$12 sps:$4 sm:$0xff]   ;;  %v3979_v0 = vld [vmem:[%s5341_s20 + $0x168] ss:$12 sps:$4 sm:$0xff]   ;;  %v3983_v31 = vld [vmem:[%s5341_s20 + $0xb0] ss:$12 sps:$4 sm:$0xff]  }
 0x473   : > { %3906 = vmatprep.mubr.bf16.mxu1 %v2510_v20  ;;  %3738 = vmatprep.subr.bf16.mxu1 %v3982_v42  ;;  %v3986_v22 = vld [vmem:[%s5341_s20 + $0x154] ss:$12 sps:$4 sm:$0xff]   ;;  %v3987_v32 = vld [vmem:[%s5341_s20 + $0x158] ss:$12 sps:$4 sm:$0xff]   ;;  %v3984_v20 = vld [vmem:[%s5341_s20 + $0x150] ss:$12 sps:$4 sm:$0xff]  }
 0x474   : > { %3907 = vmatmul.mubr.bf16.vlgmr.msra.gmra.mxu1 %v2511_v4  ;;  %v3988_v4 = vld [vmem:[%s5341_s20 + $0x98] ss:$12 sps:$4 sm:$0xff]   ;;  %v3992_v36 = vld [vmem:[%s5341_s20 + $0x140] ss:$12 sps:$4 sm:$0xff]   ;;  %v3997_v35 = vld [vmem:[%s5341_s20 + $0x128] ss:$12 sps:$4 sm:$0xff]  }
 0x475   : > { %3910 = vmatprep.mubr.bf16.mxu1 %v2512_v6  ;;  %2728 = vmatpush1.bf16.msra.mxu0 %v3952_v58  ;;  %v3991_v6 = vld [vmem:[%s5341_s20 + $0x13c] ss:$12 sps:$4 sm:$0xff]   ;;  %v3989_v8 = vld [vmem:[%s5341_s20 + $0x138] ss:$12 sps:$4 sm:$0xff]   ;;  %v3994_v13 = vld [vmem:[%s5341_s20 + $0x120] ss:$12 sps:$4 sm:$0xff]  }
 0x476   : > { %3321 = vmatprep.subr.bf16.mxu0 %v3957_v33  ;;  %3739 = vmatpush3.bf16.msra.mxu1 %v3983_v31  ;;  %v3996_v2 = vld [vmem:[%s5341_s20 + $0x124] ss:$12 sps:$4 sm:$0xff]   ;;  %v3998_v58 = vld [vmem:[%s5341_s20 + $0x68] ss:$12 sps:$4 sm:$0xff]  }
 0x477   : > { %3740 = vmatprep.subr.bf16.mxu1 %v3987_v32 }
 0x47a   : > { %3741 = vmatpush3.bf16.msra.mxu1 %v3988_v4 }
 0x47b   : > { %3742 = vmatprep.subr.bf16.mxu1 %v3992_v36 }
 0x47c   : > { %3911 = vmatmul.mubr.bf16.gmra.mxu1 %v2513_v50  ;;  %v3993_v50 = vld [vmem:[%s5341_s20 + $0x80] ss:$12 sps:$4 sm:$0xff]  }
 0x47e   : > { %3743 = vmatpush3.bf16.msra.mxu1 %v3993_v50 }
 0x47f   : > { %3744 = vmatprep.subr.bf16.mxu1 %v3997_v35 }
 0x482   : > { %3745 = vmatpush3.bf16.msra.mxu1 %v3998_v58 }
 0x534   : > { %v3908_v27 = vpop.f32.mrf.mxu1 }
 0x535   : > { %v2652_v62 = vmul.f32 %v3908_v27, %v3587_v25  ;;  %v4002_v27 = vld [vmem:[%s5341_s20 + $0x110] ss:$12 sps:$4 sm:$0xff]  }
 0x536   : > { %v2612_v17 = vpop.f32.mrf.mxu1  ;;  %3746 = vmatprep.subr.bf16.mxu1 %v4002_v27 }
 0x537   : > { %v2650_v61 = vmul.f32 %v3587_v25, %v2612_v17  ;;  %v2667_v54 = vadd.f32 %v3588_v63, %v2652_v62  ;;  %v3999_v17 = vld [vmem:[%s5341_s20 + $0x108] ss:$12 sps:$4 sm:$0xff]   ;;  %v2786_v62 = vld [vmem:[%s5339_s18] sm:$0x3] }
 0x538   : > { %v3909_v60 = vpop.f32.mrf.mxu1 }
 0x539   : > { %v2665_v26 = vadd.f32 %v3588_v63, %v2650_v61  ;;  %v2653_v53 = vmul.f32 %v3909_v60, %v3587_v25  ;;  %v4006_v60 = vld [vmem:[%s5341_s20 + $0xf4] ss:$12 sps:$4 sm:$0xff]   ;;  %v4007_v61 = vld [vmem:[%s5341_s20 + $0xf8] ss:$12 sps:$4 sm:$0xff]  }
 0x53a   : > { %v2615_v28 = vpop.f32.mrf.mxu1 }
 0x53b   : > { %v2651_v5 = vmul.f32 %v3587_v25, %v2615_v28  ;;  %v2668_v21 = vadd.f32 %v3588_v63, %v2653_v53  ;;  %v4004_v28 = vld [vmem:[%s5341_s20 + $0xf0] ss:$12 sps:$4 sm:$0xff]   ;;  %v4017_v53 = vld [vmem:[%s5341_s20 + $0xc8] ss:$12 sps:$4 sm:$0xff]  }
 0x53c   : > { %v3912_v56 = vpop.f32.mrf.mxu1 }
 0x53d   : > { %v2666_v11 = vadd.f32 %v3588_v63, %v2651_v5  ;;  %v2674_v23 = vpack.c.bf16 %v2668_v21, %v2667_v54  ;;  %v2656_v30 = vmul.f32 %v3912_v56, %v3587_v25  ;;  %v4008_v5 = vld [vmem:[%s5341_s20 + $0x38] ss:$12 sps:$4 sm:$0xff]   ;;  %v4012_v56 = vld [vmem:[%s5341_s20 + $0xe0] ss:$12 sps:$4 sm:$0xff]  }
 0x53e   : > { %v2628_v16 = vpop.f32.mrf.mxu1  ;;  %v2814_v21 = vld [vmem:[%s5340_s19] sm:$0x3] }
 0x53f   : > { %v2673_v1 = vpack.c.bf16 %v2666_v11, %v2665_v26  ;;  %v2654_v39 = vmul.f32 %v3587_v25, %v2628_v16  ;;  %v2671_v52 = vadd.f32 %v3588_v63, %v2656_v30  ;;  %v4009_v26 = vld [vmem:[%s5341_s20 + $0xd8] ss:$12 sps:$4 sm:$0xff]   ;;  %v4013_v11 = vld [vmem:[%s5341_s20 + $0x20] ss:$12 sps:$4 sm:$0xff]   ;;  %v5201_v54 = vrot.slane %v2814_v21, %v4744_v18 }
 0x540   : > { %v3913_v14 = vpop.f32.mrf.mxu1  ;;  %v4016_v16 = vld [vmem:[%s5341_s20 + $0xc4] ss:$12 sps:$4 sm:$0xff]  }
 0x541   : > { %3593 = vmatmul.mubr.msk.bf16.vlgmr.msra.gmra.mxu0 %vm1769_vm4, %v2673_v1  ;;  %v2669_v7 = vadd.f32 %v3588_v63, %v2654_v39  ;;  %v2657_v49 = vmul.f32 %v3913_v14, %v3587_v25  ;;  %v4014_v1 = vld [vmem:[%s5341_s20 + $0xc0] ss:$12 sps:$4 sm:$0xff]   ;;  %v4018_v14 = vld [vmem:[%s5341_s20 + $0x8] ss:$12 sps:$4 sm:$0xff]  }
 0x542   : > { %2755 = vmatprep.mubr.bf16.mxu0 %v4198_v57  ;;  %v2631_v45 = vpop.f32.mrf.mxu1  ;;  %3322 = vmatpush1.bf16.msra.mxu0 %v3955_v12 }
 0x543   : > { %v2655_v10 = vmul.f32 %v3587_v25, %v2631_v45  ;;  %v2672_v59 = vadd.f32 %v3588_v63, %v2657_v49  ;;  %3323 = vmatprep.subr.bf16.mxu0 %v3960_v44  ;;  %v4003_v25 = vld [vmem:[%s5341_s20 + $0x50] ss:$12 sps:$4 sm:$0xff]   ;;  %v5198_v45 = vrot.slane %v2786_v62, %v4744_v18 }
 0x544   : > { %3747 = vmatpush3.bf16.msra.mxu1 %v4003_v25 }
 0x545   : > { %v2670_v37 = vadd.f32 %v3588_v63, %v2655_v10  ;;  %v2676_v3 = vpack.c.bf16 %v2672_v59, %v2671_v52  ;;  %3748 = vmatprep.subr.bf16.mxu1 %v4007_v61  ;;  %v4011_v63 = vld [vmem:[%s5341_s20 + $0xdc] ss:$12 sps:$4 sm:$0xff]  }
 0x546   : > { %3324 = vmatpush1.bf16.msra.mxu0 %v3958_v48 }
 0x547   : > { %v2675_v29 = vpack.c.bf16 %v2670_v37, %v2669_v7  ;;  %3325 = vmatprep.subr.bf16.mxu0 %v3963_v43 }
 0x548   : > { %3749 = vmatpush3.bf16.msra.mxu1 %v4008_v5 }
 0x549   : > { %3594 = vmatmul.mubr.msk.bf16.gmra.mxu0 %vm1769_vm4, %v2674_v23  ;;  %3750 = vmatprep.subr.bf16.mxu1 %v4012_v56  ;;  %v5372_v23 = vld [vmem:[#allocation4_spill] sm:$0xff] }
 0x54a   : > { %2765 = vmatprep.mubr.bf16.mxu0 %v4198_v57  ;;  %3326 = vmatpush1.bf16.msra.mxu0 %v3961_v41  ;;  %v5204_v10 = vrot.slane %v2786_v62, %v5372_v23  ;;  %v5208_v7 = vrot.slane %v2814_v21, %v5372_v23 }
 0x54b   : > { %3327 = vmatprep.subr.bf16.mxu0 %v3966_v9 }
 0x54c   : > { %3751 = vmatpush3.bf16.msra.mxu1 %v4013_v11 }
 0x54d   : > { %3752 = vmatprep.subr.bf16.mxu1 %v4017_v53 }
 0x54e   : > { %3328 = vmatpush1.bf16.msra.mxu0 %v3964_v38 }
 0x54f   : > { %3329 = vmatprep.subr.bf16.mxu0 %v3969_v47 }
 0x550   : > { %3753 = vmatpush3.bf16.msra.mxu1 %v4018_v14 }
 0x551   : > { %3595 = vmatmul.mubr.msk.bf16.gmra.mxu0 %vm1769_vm4, %v2675_v29 }
 0x552   : > { %2775 = vmatprep.mubr.bf16.mxu0 %v4198_v57  ;;  %3330 = vmatpush1.bf16.msra.mxu0 %v3967_v46  ;;  %v4001_v57 = vld [vmem:[%s5341_s20 + $0x10c] ss:$12 sps:$4 sm:$0xff]  }
 0x553   : > { %3331 = vmatprep.subr.bf16.mxu0 %v3972_v15 }
 0x556   : > { %3332 = vmatpush1.bf16.msra.mxu0 %v3970_v51 }
 0x557   : > { %3333 = vmatprep.subr.bf16.mxu0 %v3975_v40 }
 0x559   : > { %3596 = vmatmul.mubr.msk.bf16.gmra.mxu0 %vm1769_vm4, %v2676_v3 }
 0x55a   : > { %3334 = vmatpush1.bf16.msra.mxu0 %v3973_v19 }
 0x55b   : > { %3335 = vmatprep.subr.bf16.mxu0 %v3978_v24 }
 0x55e   : > { %3336 = vmatpush1.bf16.msra.mxu0 %v3976_v55 }
 0x55f   : > { %3337 = vmatprep.subr.bf16.mxu0 %v3981_v34 }
 0x562   : > { %3338 = vmatpush2.bf16.msra.mxu0 %v3979_v0 }
 0x563   : > { %3339 = vmatprep.subr.bf16.mxu0 %v3986_v22 }
 0x566   : > { %3340 = vmatpush2.bf16.msra.mxu0 %v3984_v20 }
 0x567   : > { %3341 = vmatprep.subr.bf16.mxu0 %v3991_v6 }
 0x56a   : > { %3342 = vmatpush2.bf16.msra.mxu0 %v3989_v8 }
 0x56b   : > { %3343 = vmatprep.subr.bf16.mxu0 %v3996_v2 }
 0x56e   : > { %3344 = vmatpush2.bf16.msra.mxu0 %v3994_v13 }
 0x56f   : > { %3345 = vmatprep.subr.bf16.mxu0 %v4001_v57 }
 0x572   : > { %3346 = vmatpush2.bf16.msra.mxu0 %v3999_v17 }
 0x573   : > { %3347 = vmatprep.subr.bf16.mxu0 %v4006_v60 }
 0x576   : > { %3348 = vmatpush2.bf16.msra.mxu0 %v4004_v28 }
 0x577   : > { %3349 = vmatprep.subr.bf16.mxu0 %v4011_v63 }
 0x57a   : > { %3350 = vmatpush2.bf16.msra.mxu0 %v4009_v26 }
 0x57b   : > { %3351 = vmatprep.subr.bf16.mxu0 %v4016_v16 }
 0x57e   : > { %3352 = vmatpush2.bf16.msra.mxu0 %v4014_v1 }
 0x601   : > { %v2747_v39 = vpop.f32.mrf.mxu0 }
 0x602   : > { %v2798_v37 = vmul.f32 %v5198_v45, %v2747_v39 }
 0x603   : > { %v2749_v49 = vpop.f32.mrf.mxu0 }
 0x604   : > { %v5211_v29 = vadd.f32 %v5201_v54, %v2798_v37  ;;  %v2799_v30 = vmul.f32 %v5204_v10, %v2749_v49 }
 0x605   : > { %v2751_v59 = vpop.f32.mrf.mxu0 }
 0x606   : > { %v3597_v52 = vmul.f32 -1.442695, %v5211_v29  ;;  %v5216_v3 = vadd.f32 %v5208_v7, %v2799_v30  ;;  %v2800_v33 = vmul.f32 %v5198_v45, %v2751_v59 }
 0x607   : > { %v2753_v12 = vpop.f32.mrf.mxu0 }
 0x608   : > { %v3598_v44 = vmul.f32 -1.442695, %v5216_v3  ;;  %v5221_v48 = vadd.f32 %v5201_v54, %v2800_v33  ;;  %v2801_v43 = vmul.f32 %v5204_v10, %v2753_v12  ;;  %4123 = vpow2.f32 %v3597_v52 }
 0x609   : > { %v2757_v41 = vpop.f32.mrf.mxu0 }
 0x60a   : > { %v3599_v9 = vmul.f32 -1.442695, %v5221_v48  ;;  %v5226_v38 = vadd.f32 %v5208_v7, %v2801_v43  ;;  %v2802_v47 = vmul.f32 %v5198_v45, %v2757_v41  ;;  %4125 = vpow2.f32 %v3598_v44 }
 0x60b   : > { %v2759_v46 = vpop.f32.mrf.mxu0 }
 0x60c   : > { %v3600_v15 = vmul.f32 -1.442695, %v5226_v38  ;;  %v5231_v51 = vadd.f32 %v5201_v54, %v2802_v47  ;;  %v2803_v40 = vmul.f32 %v5204_v10, %v2759_v46  ;;  %4127 = vpow2.f32 %v3599_v9 }
 0x60d   : > { %v2761_v19 = vpop.f32.mrf.mxu0 }
 0x60e   : > { %v3601_v24 = vmul.f32 -1.442695, %v5231_v51  ;;  %v5236_v55 = vadd.f32 %v5208_v7, %v2803_v40  ;;  %v2804_v34 = vmul.f32 %v5198_v45, %v2761_v19  ;;  %4129 = vpow2.f32 %v3600_v15 }
 0x60f   : > { %v2763_v42 = vpop.f32.mrf.mxu0 }
 0x610   : > { %v3602_v0 = vmul.f32 -1.442695, %v5236_v55  ;;  %v5241_v31 = vadd.f32 %v5201_v54, %v2804_v34  ;;  %v2805_v22 = vmul.f32 %v5204_v10, %v2763_v42  ;;  %4131 = vpow2.f32 %v3601_v24 }
 0x611   : > { %v2767_v32 = vpop.f32.mrf.mxu0 }
 0x612   : > { %v3603_v20 = vmul.f32 -1.442695, %v5241_v31  ;;  %v5246_v4 = vadd.f32 %v5208_v7, %v2805_v22  ;;  %v2806_v6 = vmul.f32 %v5198_v45, %v2767_v32  ;;  %4133 = vpow2.f32 %v3602_v0 }
 0x613   : > { %v2769_v36 = vpop.f32.mrf.mxu0 }
 0x614   : > { %v3604_v8 = vmul.f32 -1.442695, %v5246_v4  ;;  %v5251_v50 = vadd.f32 %v5201_v54, %v2806_v6  ;;  %v2807_v2 = vmul.f32 %v5204_v10, %v2769_v36  ;;  %4135 = vpow2.f32 %v3603_v20 }
 0x615   : > { %v2771_v35 = vpop.f32.mrf.mxu0  ;;  %v4124_v57 = vpop.eup %4123 }
 0x616   : > { %4137 = vpow2.f32 %v3604_v8  ;;  %v3605_v13 = vmul.f32 -1.442695, %v5251_v50  ;;  %v5256_v58 = vadd.f32 %v5208_v7, %v2807_v2  ;;  %v2808_v27 = vmul.f32 %v5198_v45, %v2771_v35 }
 0x617   : > { %v2773_v17 = vpop.f32.mrf.mxu0  ;;  %v4126_v61 = vpop.eup %4125  ;;  %v2890_v63 = vadd.f32 1.0, %v4124_v57 }
 0x618   : > { %v3606_v25 = vmul.f32 -1.442695, %v5256_v58  ;;  %v2809_v60 = vmul.f32 %v5204_v10, %v2773_v17  ;;  %4139 = vpow2.f32 %v3605_v13  ;;  %v5262_v28 = vadd.f32 %v5201_v54, %v2808_v27 }
 0x619   : > { %v2777_v5 = vpop.f32.mrf.mxu0  ;;  %v4128_v11 = vpop.eup %4127  ;;  %v2891_v1 = vadd.f32 1.0, %v4126_v61 }
 0x61a   : > { %v5265_v56 = vadd.f32 %v5208_v7, %v2809_v60  ;;  %v2810_v26 = vmul.f32 %v5198_v45, %v2777_v5  ;;  %4141 = vpow2.f32 %v3606_v25  ;;  %v3607_v16 = vmul.f32 -1.442695, %v5262_v28 }
 0x61b   : > { %v2779_v53 = vpop.f32.mrf.mxu0  ;;  %v4130_v21 = vpop.eup %4129  ;;  %v2892_v49 = vadd.f32 1.0, %v4128_v11 }
 0x61c   : > { %v3608_v14 = vmul.f32 -1.442695, %v5265_v56  ;;  %v5271_v62 = vadd.f32 %v5201_v54, %v2810_v26  ;;  %4143 = vpow2.f32 %v3607_v16  ;;  %v2811_v39 = vmul.f32 %v5204_v10, %v2779_v53 }
 0x61d   : > { %v2781_v37 = vpop.f32.mrf.mxu0  ;;  %4145 = vrcp.f32 %v2890_v63  ;;  %v4132_v52 = vpop.eup %4131  ;;  %v2893_v44 = vadd.f32 1.0, %v4130_v21 }
 0x61e   : > { %v3609_v30 = vmul.f32 -1.442695, %v5271_v62  ;;  %v2812_v59 = vmul.f32 %v5198_v45, %v2781_v37  ;;  %4147 = vpow2.f32 %v3608_v14  ;;  %v5277_v33 = vadd.f32 %v5208_v7, %v2811_v39 }
 0x61f   : > { %v2783_v12 = vpop.f32.mrf.mxu0  ;;  %4149 = vrcp.f32 %v2891_v1  ;;  %v4134_v9 = vpop.eup %4133  ;;  %v2894_v45 = vadd.f32 1.0, %v4132_v52 }
 0x620   : > { %v5280_v43 = vadd.f32 %v5201_v54, %v2812_v59  ;;  %v2813_v41 = vmul.f32 %v5204_v10, %v2783_v12  ;;  %4151 = vpow2.f32 %v3609_v30  ;;  %v3610_v47 = vmul.f32 -1.442695, %v5277_v33 }
 0x621   : > { %v4136_v46 = vpop.eup %4135  ;;  %4153 = vrcp.f32 %v2892_v49  ;;  %v2895_v24 = vadd.f32 1.0, %v4134_v9 }
 0x622   : > { %v3611_v15 = vmul.f32 -1.442695, %v5280_v43  ;;  %v5286_v40 = vadd.f32 %v5208_v7, %v2813_v41  ;;  %4155 = vpow2.f32 %v3610_v47  ;;  %v2896_v34 = vadd.f32 1.0, %v4136_v46 }
 0x623   : > { %v4138_v19 = vpop.eup %4137  ;;  %4157 = vrcp.f32 %v2893_v44 }
 0x624   : > { %v3612_v54 = vmul.f32 -1.442695, %v5286_v40  ;;  %4159 = vpow2.f32 %v3611_v15  ;;  %v2897_v42 = vadd.f32 1.0, %v4138_v19 }
 0x625   : > { %v4140_v10 = vpop.eup %4139  ;;  %4161 = vrcp.f32 %v2894_v45 }
 0x626   : > { %v2898_v0 = vadd.f32 1.0, %v4140_v10  ;;  %4163 = vpow2.f32 %v3612_v54 }
 0x627   : > { %v4142_v22 = vpop.eup %4141  ;;  %4165 = vrcp.f32 %v2895_v24 }
 0x628   : > { %4167 = vrcp.f32 %v2896_v34  ;;  %v2899_v32 = vadd.f32 1.0, %v4142_v22 }
 0x629   : > { %v4144_v20 = vpop.eup %4143  ;;  %4169 = vrcp.f32 %v2897_v42 }
 0x62a   : > { %v4146_v7 = vpop.eup %4145  ;;  %4171 = vrcp.f32 %v2898_v0  ;;  %v2900_v6 = vadd.f32 1.0, %v4144_v20 }
 0x62b   : > { %v4148_v36 = vpop.eup %4147  ;;  %4173 = vrcp.f32 %v2899_v32  ;;  %v2938_v14 = vmul.f32 %v4146_v7, %v5211_v29 }
 0x62c   : > { %v4150_v8 = vpop.eup %4149  ;;  %4175 = vrcp.f32 %v2900_v6  ;;  %v2901_v2 = vadd.f32 1.0, %v4148_v36 }
 0x62d   : > { %v4152_v35 = vpop.eup %4151  ;;  %v2939_v30 = vmul.f32 %v4150_v8, %v5216_v3 }
 0x62e   : > { %v4154_v13 = vpop.eup %4153  ;;  %4177 = vrcp.f32 %v2901_v2  ;;  %v2902_v57 = vadd.f32 1.0, %v4152_v35 }
 0x62f   : > { %v4156_v27 = vpop.eup %4155  ;;  %v2940_v11 = vmul.f32 %v4154_v13, %v5221_v48 }
 0x630   : > { %v4158_v17 = vpop.eup %4157  ;;  %4179 = vrcp.f32 %v2902_v57  ;;  %v2903_v25 = vadd.f32 1.0, %v4156_v27 }
 0x631   : > { %v4160_v60 = vpop.eup %4159  ;;  %v2941_v21 = vmul.f32 %v4158_v17, %v5226_v38  ;;  %v2954_v59 = vadd.f32 %v2940_v11, %v2938_v14 }
 0x632   : > { %v4162_v61 = vpop.eup %4161  ;;  %4181 = vrcp.f32 %v2903_v25  ;;  %v2904_v5 = vadd.f32 1.0, %v4160_v60 }
 0x633   : > { %v4164_v63 = vpop.eup %4163  ;;  %v2942_v39 = vmul.f32 %v4162_v61, %v5231_v51  ;;  %v2967_v44 = vadd.f32 %v2941_v21, %v2939_v30 }
 0x634   : > { %v4166_v26 = vpop.eup %4165  ;;  %4183 = vrcp.f32 %v2904_v5  ;;  %v2905_v16 = vadd.f32 1.0, %v4164_v63  ;;  %v3048_v5 = vld [vmem:[%s5342_s21] sm:$0x7] }
 0x635   : > { %v4168_v53 = vpop.eup %4167  ;;  %v2943_v52 = vmul.f32 %v4166_v26, %v5236_v55  ;;  %v2955_v41 = vadd.f32 %v2954_v59, %v2942_v39  ;;  %v3309_v63 = vrot.slane %v3048_v5, %v4744_v18  ;;  %v3313_v26 = vrot.slane %v3048_v5, %v5372_v23 }
 0x636   : > { %v4170_v1 = vpop.eup %4169  ;;  %4185 = vrcp.f32 %v2905_v16  ;;  %v2944_v48 = vmul.f32 %v4168_v53, %v5241_v31 }
 0x637   : > { %v4172_v37 = vpop.eup %4171  ;;  %v2945_v9 = vmul.f32 %v4170_v1, %v5246_v4  ;;  %v2968_v47 = vadd.f32 %v2967_v44, %v2943_v52  ;;  %v5373_v1 = vld [vmem:[#allocation3_spill] sm:$0xff] }
 0x638   : > { %v4174_v49 = vpop.eup %4173  ;;  %v2946_v29 = vmul.f32 %v4172_v37, %v5251_v50  ;;  %v2956_v51 = vadd.f32 %v2955_v41, %v2944_v48  ;;  %v5374_v14 = vsub.s32 2, %v5373_v1 }
 0x639   : > { %v4176_v12 = vpop.eup %4175  ;;  %v2947_v46 = vmul.f32 %v4174_v49, %v5256_v58  ;;  %v2969_v15 = vadd.f32 %v2968_v47, %v2945_v9  ;;  %v5375_v47 = vlaneseq }
 0x63a   : > { %v2948_v45 = vmul.f32 %v4176_v12, %v5262_v28  ;;  %v2957_v19 = vadd.f32 %v2956_v51, %v2946_v29  ;;  %v3317_v21 = vrot.slane %v3048_v5, %v5374_v14 }
 0x63b   : > { %v4178_v38 = vpop.eup %4177  ;;  %v2970_v54 = vadd.f32 %v2969_v15, %v2947_v46  ;;  %vm3431_vm6 = vcmp.lt.s32.totalorder %v5375_v47, 384 }
 0x63c   : > { %v2949_v55 = vmul.f32 %v4178_v38, %v5265_v56  ;;  %v2958_v34 = vadd.f32 %v2957_v19, %v2948_v45 }
 0x63d   : > { %v4180_v3 = vpop.eup %4179 }
 0x63e   : > { %v2950_v31 = vmul.f32 %v4180_v3, %v5271_v62  ;;  %v2971_v10 = vadd.f32 %v2970_v54, %v2949_v55 }
 0x63f   : > { %v4182_v24 = vpop.eup %4181 }
 0x640   : > { %v2951_v4 = vmul.f32 %v4182_v24, %v5277_v33  ;;  %v2959_v42 = vadd.f32 %v2958_v34, %v2950_v31 }
 0x641   : > { %v4184_v50 = vpop.eup %4183 }
 0x642   : > { %v2952_v0 = vmul.f32 %v4184_v50, %v5280_v43  ;;  %v2972_v22 = vadd.f32 %v2971_v10, %v2951_v4 }
 0x643   : > { %v4186_v58 = vpop.eup %4185 }
 0x644   : > { %v2960_v28 = vadd.f32 %v2959_v42, %v2952_v0  ;;  %v2953_v32 = vmul.f32 %v4186_v58, %v5286_v40  ;;  %v4199_v40 = vmov 1966171168  }
 0x645   : > { %v3407_v61 = vunpack.c.l.s4 %v4199_v40 }
 0x646   : > { %v2961_v20 = vrot.slane %v2960_v28, 4  ;;  %v2973_v7 = vadd.f32 %v2972_v22, %v2953_v32 }
 0x647   : > { %v3408_v11 = vunpack.c.0.s8 %v3407_v61 }
 0x648   : > { %v2962_v56 = vadd.f32 %v2961_v20, %v2960_v28  ;;  %v2974_v6 = vrot.slane %v2973_v7, 4 }
 0x649   : > { %v3411_v59 = vsub.s32 %v3408_v11, %v5373_v1 }
 0x64a   : > { %v2963_v62 = vrot.slane %v2962_v56, 2  ;;  %v2975_v36 = vadd.f32 %v2974_v6, %v2973_v7 }
 0x64c   : > { %v2964_v8 = vadd.f32 %v2963_v62, %v2962_v56  ;;  %v2976_v2 = vrot.slane %v2975_v36, 2 }
 0x64e   : > { %v2965_v35 = vrot.slane %v2964_v8, 1  ;;  %v2977_v33 = vadd.f32 %v2976_v2, %v2975_v36 }
 0x650   : > { %v2966_v13 = vadd.f32 %v2965_v35, %v2964_v8  ;;  %v2978_v57 = vrot.slane %v2977_v33, 1 }
 0x652   : > { %v2979_v27 = vadd.f32 %v2978_v57, %v2977_v33  ;;  %v2980_v17 = vmul.f32 0.015625, %v2966_v13 }
 0x654   : > { %v2981_v43 = vmul.f32 0.015625, %v2979_v27  ;;  %v2982_v60 = vpack.c.bf16 %v2980_v17, %v2980_v17 }
 0x656   : > { %v2983_v25 = vpack.c.bf16 %v2981_v43, %v2981_v43 }
 0x658   : > { %3353 = vmatprep.mubr.bf16.mxu0 %v2983_v25  ;;  %3394 = vmatprep.mubr.bf16.mxu1 %v2983_v25 }
 0x659   : > { %3354 = vmatmul.mubr.bf16.vlgmr.msra.gmra.mxu0 %v2982_v60  ;;  %3395 = vmatmul.mubr.bf16.vlgmr.msra.gmra.mxu1 %v2982_v60 }
 0x719   : > { %v3355_v16 = vpop.f32.mrf.mxu0  ;;  %v3754_v53 = vpop.f32.mrf.mxu1 }
 0x71a   : > { %v3356_v49 = vadd.f32 %v3355_v16, %v3309_v63 }
 0x71b   : > { %v3357_v39 = vpop.f32.mrf.mxu0  ;;  %v3755_v37 = vpop.f32.mrf.mxu1 }
 0x71c   : > { %v3358_v30 = vadd.f32 %v3357_v39, %v3313_v26  ;;  %v3756_v52 = vadd.f32 %v3755_v37, %v3754_v53 }
 0x71d   : > { %v3359_v48 = vpop.f32.mrf.mxu0  ;;  %v3757_v12 = vpop.f32.mrf.mxu1 }
 0x71e   : > { %v3405_v44 = vcombine.low %v3356_v49, %v3358_v30  ;;  %v3397_v18 = vadd.f32 %v3756_v52, %v3317_v21 }
 0x71f   : > { %v3360_v41 = vpop.f32.mrf.mxu0  ;;  %v3758_v23 = vpop.f32.mrf.mxu1 }
 0x720   : > { %v3412_v9 = vrot.slane %v3405_v44, %v3411_v59  ;;  %v3419_v29 = vrot.slane %v3397_v18, %v3411_v59 }
 0x722   : > { %v3420_v38 = vcombine.low %v3412_v9, %v3419_v29 }
 0x724   : > { %v3427_v51 = vrot.slane %v3420_v38, %v3411_v59 }
 0x726   : > { %3433 = vst.msk [vmem:[%s681_s5] sm:$0x7] %vm3431_vm6, %v3427_v51 }
 0x727 PF: > { %s32_s3 = sadd.s32 1, %s4193_s3  }
 0x728   : > { %p29_p4 = scmp.ge.s32.totalorder %s32_s3, 4  }
 0x72a   :  { %31 = sbr.rel (!%p29_p4) target bundleno = 8 (0x8), region = 140 }

</bundles_post_ra>
